<compile_context>
chip_gen: v7x
topology: tpu7x:2x2x1
jax: 0.10.0
libtpu: 0.0.40
codegen_flags: <defaults>
</compile_context>

<pallas_src>
import jax
import jax.numpy as jnp
from jax.experimental import pallas as pl
from jax.experimental.pallas import tpu as pltpu

H = W = 32                     # required so 16 * (H/8) * (W/8) == 256 for the fc
CIN = 3
COUT = 16
KH = KW = 3
POOL = 8
PH, PW = H // POOL, W // POOL  # 4, 4
HP = H + 2                     # 34 zero-padded image rows
ROW_RAW = (W + 2) * CIN        # 102 packed (w_padded, cin) columns
KROW = 128                     # row width padded to one full lane tile
WC = W * COUT                  # 512 conv-output columns, laid out as (w, cout)
FC_IN = COUT * PH * PW         # 256
FC_OUT = 10
NOUT = 128                     # fc output padded lane-dense (10 -> 128)
EPS = 1e-5


def simple_model_kernel(x_ref, m_ref, bias_ref, ffc_ref, fcb_ref, o_ref, y_ref):
    """One batch chunk (Bt images) per grid step.

    x_ref   : (Bt, 34, 128)  zero-padded raw images; lanes = (w_pad, cin),
                             channel-minor (first 102 lanes used, rest zero)
    m_ref   : (3, 128, 512)  structured conv weights (BN scale folded in),
                             one matrix per kernel row dy; cols = (w, cout)
    bias_ref: (1, 512)       folded BN bias, tiled over w
    ffc_ref : (4, 512, 128)  per-pool-row fc weights with AvgPool's 1/64 and
                             the w-pooling folded in; fc out padded 10 -> 128
    fcb_ref : (1, 128)       fc bias (padded)
    o_ref   : (1, Bt, 128)
    y_ref   : (Bt, 32, 512)  f32 scratch: conv-output accumulator
    """
    bt = x_ref.shape[0]

    # Conv3x3 (+ folded BN scale): 3 structured matmuls, one per kernel row.
    # The dy shift is a sublane-offset slice of the padded-image block.
    for dy in range(KH):
        xs = x_ref[:, dy:dy + H, :].reshape(bt * H, KROW)           # (Bt*32, 128)
        z = jnp.dot(xs, m_ref[dy], preferred_element_type=jnp.float32)
        z = z.reshape(bt, H, WC)                                    # (Bt, 32, 512)
        if dy == 0:
            y_ref[...] = z
        else:
            y_ref[...] += z

    # Folded BatchNorm bias + ReLU.
    y_ref[...] = jnp.maximum(y_ref[...] + bias_ref[...], 0.0)

    # AvgPool2d(8) + Linear(256 -> 10): pooling over h is an aligned 8-row sum;
    # pooling over w and the 1/64 are folded into ffc, so the tail is 4 K=512
    # matmuls accumulated in f32 (output lane-dense, padded to 128).
    acc = None
    for ph in range(PH):
        pooled = jnp.sum(y_ref[:, ph * POOL:(ph + 1) * POOL, :], axis=1)  # (Bt, 512)
        t = jnp.dot(pooled, ffc_ref[ph], preferred_element_type=jnp.float32)
        acc = t if acc is None else acc + t
    o_ref[0] = acc + fcb_ref[...]


@jax.jit
def simple_model_forward(x_nchw, params):
    # TODO(synk): training-mode BatchNorm (batch statistics over B*H*W and
    # running-stat updates) is not implemented; eval-mode running stats are
    # folded into the conv weights/bias below.
    conv_w, gamma, beta, run_mean, run_var, fc_w, fc_b = params
    B = x_nchw.shape[0]
    assert x_nchw.shape[1:] == (CIN, H, W), "kernel assumes 3x32x32 inputs (fc expects 256)"

    # Batch tiling: <=16 images per grid step, and >=2 grid steps whenever
    # B >= 2 so the "parallel" grid axis can shard across both v7x TensorCores.
    Bt = min(16, max(1, (B + 1) // 2))
    nb = (B + Bt - 1) // Bt
    B_pad = nb * Bt

    # ---- raw-image prep (no im2col): NCHW -> NHWC, zero-pad, row-pack ----
    x = jnp.transpose(x_nchw, (0, 2, 3, 1)).astype(jnp.float32)        # (B,32,32,3)
    if B_pad != B:
        x = jnp.pad(x, ((0, B_pad - B), (0, 0), (0, 0), (0, 0)))
    xp = jnp.pad(x, ((0, 0), (1, 1), (1, 1), (0, 0)))                  # (B_pad,34,34,3)
    xrow = xp.reshape(B_pad, HP, ROW_RAW)                              # (B_pad,34,102)
    xrow = jnp.pad(xrow, ((0, 0), (0, 0), (0, KROW - ROW_RAW)))        # (B_pad,34,128)

    # ---- fold eval-mode BN scale into the conv weights; build the banded
    #      per-kernel-row matrices M[dy] with M[dy, (w+dx)*3+c, w*16+o] = We[o,c,dy,dx]
    scale = gamma / jnp.sqrt(run_var + EPS)                            # (16,)
    we = (conv_w * scale[:, None, None, None]).astype(jnp.float32)     # (o,c,dy,dx)
    bias_row = jnp.tile((beta - run_mean * scale).astype(jnp.float32), W).reshape(1, WC)

    w_ar = jnp.arange(W)
    dx_ar = jnp.arange(KW)
    c_ar = jnp.arange(CIN)
    j = (w_ar[:, None, None] + dx_ar[None, :, None]) * CIN + c_ar[None, None, :]  # (32,3,3)
    oh = jax.nn.one_hot(j, KROW, dtype=jnp.float32)                    # (32,3,3,128)
    m = jnp.einsum('wxcj,ocyx->yjwo', oh, we).reshape(KH, KROW, WC)    # (3,128,512)

    # ---- fold AvgPool's 1/64, the w-pooling, and torch's (c,ph,pw) flatten
    #      order into the fc weights; pad fc out 10 -> 128 (lane-dense output).
    fc4 = fc_w.reshape(FC_OUT, COUT, PH, PW).astype(jnp.float32)       # (t,o,ph,pw)
    g = fc4[:, :, :, jnp.arange(W) // POOL]                            # (t,o,ph,w)
    ffc = (jnp.transpose(g, (2, 3, 1, 0)).reshape(PH, WC, FC_OUT)
           / float(POOL * POOL))                                       # (4,512,10)
    ffc = jnp.pad(ffc, ((0, 0), (0, 0), (0, NOUT - FC_OUT)))           # (4,512,128)
    fcb = jnp.pad(fc_b.astype(jnp.float32), (0, NOUT - FC_OUT)).reshape(1, NOUT)

    cost = pl.CostEstimate(
        flops=2 * B_pad * H * KH * KROW * WC + 2 * B_pad * PH * WC * NOUT,
        transcendentals=0,
        bytes_accessed=4 * (B_pad * HP * KROW + KH * KROW * WC
                            + PH * WC * NOUT + WC + NOUT + B_pad * NOUT))

    out = pl.pallas_call(
        simple_model_kernel,
        out_shape=jax.ShapeDtypeStruct((nb, Bt, NOUT), jnp.float32),
        grid=(nb,),
        in_specs=[
            pl.BlockSpec((Bt, HP, KROW), lambda i: (i, 0, 0)),     # images
            pl.BlockSpec((KH, KROW, WC), lambda i: (0, 0, 0)),     # conv mats
            pl.BlockSpec((1, WC), lambda i: (0, 0)),               # BN bias row
            pl.BlockSpec((PH, WC, NOUT), lambda i: (0, 0, 0)),     # pool+fc mats
            pl.BlockSpec((1, NOUT), lambda i: (0, 0)),             # fc bias
        ],
        out_specs=pl.BlockSpec((1, Bt, NOUT), lambda i: (i, 0, 0)),
        scratch_shapes=[pltpu.VMEM((Bt, H, WC), jnp.float32)],
        compiler_params=pltpu.CompilerParams(
            dimension_semantics=("parallel",),
            vmem_limit_bytes=32 * 1024 * 1024),
        cost_estimate=cost,
    )(xrow, m, bias_row, ffc, fcb)

    return out.reshape(B_pad, NOUT)[:B, :FC_OUT]


def torch_reference(x_nchw, params):
    """Pure-JAX NCHW reference reproducing the PyTorch forward (eval mode)."""
    conv_w, gamma, beta, run_mean, run_var, fc_w, fc_b = params
    out0 = jax.lax.conv_general_dilated(
        x_nchw, conv_w, window_strides=(1, 1), padding=((1, 1), (1, 1)),
        dimension_numbers=('NCHW', 'OIHW', 'NCHW'))
    inv = 1.0 / jnp.sqrt(run_var + EPS)
    out1 = ((out0 - run_mean[None, :, None, None]) * inv[None, :, None, None]
            * gamma[None, :, None, None] + beta[None, :, None, None])
    out2 = jnp.maximum(out1, 0.0)
    B, C, Hh, Ww = out2.shape
    out3 = out2.reshape(B, C, Hh // POOL, POOL, Ww // POOL, POOL).mean(axis=(3, 5))
    out4 = out3.reshape(B, -1)
    return out4 @ fc_w.T + fc_b


if __name__ == "__main__":
    key = jax.random.PRNGKey(0)
    k = jax.random.split(key, 8)
    B = 2
    x = jax.random.normal(k[0], (B, CIN, H, W), jnp.float32)

    # Deterministic synthetic parameters (module __init__ shapes).
    conv_w = 0.1 * jax.random.normal(k[1], (COUT, CIN, 3, 3), jnp.float32)
    gamma = 1.0 + 0.1 * jax.random.normal(k[2], (COUT,), jnp.float32)
    beta = 0.1 * jax.random.normal(k[3], (COUT,), jnp.float32)
    run_mean = 0.05 * jax.random.normal(k[4], (COUT,), jnp.float32)
    run_var = 1.0 + 0.1 * jax.random.uniform(k[5], (COUT,), jnp.float32)
    fc_w = 0.05 * jax.random.normal(k[6], (FC_OUT, FC_IN), jnp.float32)
    fc_b = 0.1 * jax.random.normal(k[7], (FC_OUT,), jnp.float32)
    params = (conv_w, gamma, beta, run_mean, run_var, fc_w, fc_b)

    out = jax.block_until_ready(simple_model_forward(x, params))
    ref = jax.block_until_ready(torch_reference(x, params))

    assert out.shape == (B, FC_OUT)
    assert jnp.allclose(out, ref, rtol=1e-3, atol=1e-3), (out, ref)
    print("KERNEL_OK")
</pallas_src>

<mosaic_0001>
module attributes {stable_mosaic.version = 11 : i64} {
  func.func @simple_model_kernel(%arg0: i32, %arg1: memref<1x34x128xf32, #tpu.memory_space<vmem>>, %arg2: memref<3x128x512xf32, #tpu.memory_space<vmem>>, %arg3: memref<1x512xf32, #tpu.memory_space<vmem>>, %arg4: memref<4x512x128xf32, #tpu.memory_space<vmem>>, %arg5: memref<1x128xf32, #tpu.memory_space<vmem>>, %arg6: memref<1x1x128xf32, #tpu.memory_space<vmem>>, %arg7: memref<1x32x512xf32, #tpu.memory_space<vmem>>) attributes {dimension_semantics = [#tpu.dimension_semantics<parallel>], iteration_bounds = array<i64: 2>, scalar_prefetch = 0 : i64, scratch_operands = 1 : i64, tpu.core_type = #tpu.core_type<tc>, window_params = [{transform_indices = @transform_0, window_bounds = array<i64: 1, 34, 128>}, {pipeline_mode = #tpu.pipeline_mode<synchronous>, transform_indices = @transform_1, window_bounds = array<i64: 3, 128, 512>}, {pipeline_mode = #tpu.pipeline_mode<synchronous>, transform_indices = @transform_2, window_bounds = array<i64: 1, 512>}, {pipeline_mode = #tpu.pipeline_mode<synchronous>, transform_indices = @transform_3, window_bounds = array<i64: 4, 512, 128>}, {pipeline_mode = #tpu.pipeline_mode<synchronous>, transform_indices = @transform_4, window_bounds = array<i64: 1, 128>}, {transform_indices = @transform_5, window_bounds = array<i64: 1, 1, 128>}]} {
    %c0 = arith.constant 0 : index
    %c0_0 = arith.constant 0 : index
    %c0_1 = arith.constant 0 : index
    %0 = vector.load %arg1[%c0, %c0_0, %c0_1] : memref<1x34x128xf32, #tpu.memory_space<vmem>>, vector<1x32x128xf32>
    %1 = vector.shape_cast %0 : vector<1x32x128xf32> to vector<32x128xf32>
    %c0_2 = arith.constant 0 : index
    %c0_3 = arith.constant 0 : index
    %c0_4 = arith.constant 0 : index
    %2 = vector.load %arg2[%c0_2, %c0_3, %c0_4] : memref<3x128x512xf32, #tpu.memory_space<vmem>>, vector<1x128x512xf32>
    %3 = vector.shape_cast %2 : vector<1x128x512xf32> to vector<128x512xf32>
    %cst = arith.constant dense<0.000000e+00> : vector<32x512xf32>
    %4 = tpu.matmul %1, %3, %cst {dimension_numbers = #tpu.dot_dimension_numbers<[1], [0], [0], [1], [0, 0, 1, 1], [], []>} : vector<32x128xf32>, vector<128x512xf32>, vector<32x512xf32> -> vector<32x512xf32>
    %5 = vector.shape_cast %4 : vector<32x512xf32> to vector<1x32x512xf32>
    %c0_5 = arith.constant 0 : index
    %c0_6 = arith.constant 0 : index
    %c0_7 = arith.constant 0 : index
    %6 = vector.load %arg7[%c0_5, %c0_6, %c0_7] : memref<1x32x512xf32, #tpu.memory_space<vmem>>, vector<1x32x512xf32>
    tpu.vector_store %arg7[%c0_5, %c0_6, %c0_7], %5 {strides = array<i32>} : memref<1x32x512xf32, #tpu.memory_space<vmem>>, vector<1x32x512xf32>,
    %c0_8 = arith.constant 0 : index
    %c1 = arith.constant 1 : index
    %c0_9 = arith.constant 0 : index
    %7 = vector.load %arg1[%c0_8, %c1, %c0_9] : memref<1x34x128xf32, #tpu.memory_space<vmem>>, vector<1x32x128xf32>
    %8 = vector.shape_cast %7 : vector<1x32x128xf32> to vector<32x128xf32>
    %c1_10 = arith.constant 1 : index
    %c0_11 = arith.constant 0 : index
    %c0_12 = arith.constant 0 : index
    %9 = vector.load %arg2[%c1_10, %c0_11, %c0_12] : memref<3x128x512xf32, #tpu.memory_space<vmem>>, vector<1x128x512xf32>
    %10 = vector.shape_cast %9 : vector<1x128x512xf32> to vector<128x512xf32>
    %cst_13 = arith.constant dense<0.000000e+00> : vector<32x512xf32>
    %11 = tpu.matmul %8, %10, %cst_13 {dimension_numbers = #tpu.dot_dimension_numbers<[1], [0], [0], [1], [0, 0, 1, 1], [], []>} : vector<32x128xf32>, vector<128x512xf32>, vector<32x512xf32> -> vector<32x512xf32>
    %12 = vector.shape_cast %11 : vector<32x512xf32> to vector<1x32x512xf32>
    %c0_14 = arith.constant 0 : index
    %c0_15 = arith.constant 0 : index
    %c0_16 = arith.constant 0 : index
    %13 = vector.load %arg7[%c0_14, %c0_15, %c0_16] : memref<1x32x512xf32, #tpu.memory_space<vmem>>, vector<1x32x512xf32>
    %14 = arith.addf %13, %12 : vector<1x32x512xf32>
    %c0_17 = arith.constant 0 : index
    %c0_18 = arith.constant 0 : index
    %c0_19 = arith.constant 0 : index
    %15 = vector.load %arg7[%c0_17, %c0_18, %c0_19] : memref<1x32x512xf32, #tpu.memory_space<vmem>>, vector<1x32x512xf32>
    tpu.vector_store %arg7[%c0_17, %c0_18, %c0_19], %14 {strides = array<i32>} : memref<1x32x512xf32, #tpu.memory_space<vmem>>, vector<1x32x512xf32>,
    %c0_20 = arith.constant 0 : index
    %c2 = arith.constant 2 : index
    %c0_21 = arith.constant 0 : index
    %16 = vector.load %arg1[%c0_20, %c2, %c0_21] : memref<1x34x128xf32, #tpu.memory_space<vmem>>, vector<1x32x128xf32>
    %17 = vector.shape_cast %16 : vector<1x32x128xf32> to vector<32x128xf32>
    %c2_22 = arith.constant 2 : index
    %c0_23 = arith.constant 0 : index
    %c0_24 = arith.constant 0 : index
    %18 = vector.load %arg2[%c2_22, %c0_23, %c0_24] : memref<3x128x512xf32, #tpu.memory_space<vmem>>, vector<1x128x512xf32>
    %19 = vector.shape_cast %18 : vector<1x128x512xf32> to vector<128x512xf32>
    %cst_25 = arith.constant dense<0.000000e+00> : vector<32x512xf32>
    %20 = tpu.matmul %17, %19, %cst_25 {dimension_numbers = #tpu.dot_dimension_numbers<[1], [0], [0], [1], [0, 0, 1, 1], [], []>} : vector<32x128xf32>, vector<128x512xf32>, vector<32x512xf32> -> vector<32x512xf32>
    %21 = vector.shape_cast %20 : vector<32x512xf32> to vector<1x32x512xf32>
    %c0_26 = arith.constant 0 : index
    %c0_27 = arith.constant 0 : index
    %c0_28 = arith.constant 0 : index
    %22 = vector.load %arg7[%c0_26, %c0_27, %c0_28] : memref<1x32x512xf32, #tpu.memory_space<vmem>>, vector<1x32x512xf32>
    %23 = arith.addf %22, %21 : vector<1x32x512xf32>
    %c0_29 = arith.constant 0 : index
    %c0_30 = arith.constant 0 : index
    %c0_31 = arith.constant 0 : index
    %24 = vector.load %arg7[%c0_29, %c0_30, %c0_31] : memref<1x32x512xf32, #tpu.memory_space<vmem>>, vector<1x32x512xf32>
    tpu.vector_store %arg7[%c0_29, %c0_30, %c0_31], %23 {strides = array<i32>} : memref<1x32x512xf32, #tpu.memory_space<vmem>>, vector<1x32x512xf32>,
    %c0_32 = arith.constant 0 : index
    %c0_33 = arith.constant 0 : index
    %c0_34 = arith.constant 0 : index
    %25 = vector.load %arg7[%c0_32, %c0_33, %c0_34] : memref<1x32x512xf32, #tpu.memory_space<vmem>>, vector<1x32x512xf32>
    %c0_35 = arith.constant 0 : index
    %c0_36 = arith.constant 0 : index
    %26 = vector.load %arg3[%c0_35, %c0_36] : memref<1x512xf32, #tpu.memory_space<vmem>>, vector<1x512xf32>
    %27 = vector.shape_cast %26 : vector<1x512xf32> to vector<1x1x512xf32>
    %28 = vector.broadcast %27 : vector<1x1x512xf32> to vector<1x32x512xf32>
    %29 = arith.addf %25, %28 : vector<1x32x512xf32>
    %cst_37 = arith.constant 0.000000e+00 : f32
    %30 = vector.broadcast %cst_37 : f32 to vector<1x32x512xf32>
    %31 = arith.maximumf %29, %30 : vector<1x32x512xf32>
    %c0_38 = arith.constant 0 : index
    %c0_39 = arith.constant 0 : index
    %c0_40 = arith.constant 0 : index
    %32 = vector.load %arg7[%c0_38, %c0_39, %c0_40] : memref<1x32x512xf32, #tpu.memory_space<vmem>>, vector<1x32x512xf32>
    tpu.vector_store %arg7[%c0_38, %c0_39, %c0_40], %31 {strides = array<i32>} : memref<1x32x512xf32, #tpu.memory_space<vmem>>, vector<1x32x512xf32>,
    %c0_41 = arith.constant 0 : index
    %c0_42 = arith.constant 0 : index
    %c0_43 = arith.constant 0 : index
    %33 = vector.load %arg7[%c0_41, %c0_42, %c0_43] : memref<1x32x512xf32, #tpu.memory_space<vmem>>, vector<1x8x512xf32>
    %cst_44 = arith.constant dense<0.000000e+00> : vector<1x512xf32>
    %34 = vector.multi_reduction <add>, %33, %cst_44 [1] : vector<1x8x512xf32> to vector<1x512xf32>
    %c0_45 = arith.constant 0 : index
    %c0_46 = arith.constant 0 : index
    %c0_47 = arith.constant 0 : index
    %35 = vector.load %arg4[%c0_45, %c0_46, %c0_47] : memref<4x512x128xf32, #tpu.memory_space<vmem>>, vector<1x512x128xf32>
    %36 = vector.shape_cast %35 : vector<1x512x128xf32> to vector<512x128xf32>
    %cst_48 = arith.constant dense<0.000000e+00> : vector<1x128xf32>
    %37 = tpu.matmul %34, %36, %cst_48 {dimension_numbers = #tpu.dot_dimension_numbers<[1], [0], [0], [1], [0, 0, 1, 1], [], []>} : vector<1x512xf32>, vector<512x128xf32>, vector<1x128xf32> -> vector<1x128xf32>
    %c0_49 = arith.constant 0 : index
    %c8 = arith.constant 8 : index
    %c0_50 = arith.constant 0 : index
    %38 = vector.load %arg7[%c0_49, %c8, %c0_50] : memref<1x32x512xf32, #tpu.memory_space<vmem>>, vector<1x8x512xf32>
    %cst_51 = arith.constant dense<0.000000e+00> : vector<1x512xf32>
    %39 = vector.multi_reduction <add>, %38, %cst_51 [1] : vector<1x8x512xf32> to vector<1x512xf32>
    %c1_52 = arith.constant 1 : index
    %c0_53 = arith.constant 0 : index
    %c0_54 = arith.constant 0 : index
    %40 = vector.load %arg4[%c1_52, %c0_53, %c0_54] : memref<4x512x128xf32, #tpu.memory_space<vmem>>, vector<1x512x128xf32>
    %41 = vector.shape_cast %40 : vector<1x512x128xf32> to vector<512x128xf32>
    %cst_55 = arith.constant dense<0.000000e+00> : vector<1x128xf32>
    %42 = tpu.matmul %39, %41, %cst_55 {dimension_numbers = #tpu.dot_dimension_numbers<[1], [0], [0], [1], [0, 0, 1, 1], [], []>} : vector<1x512xf32>, vector<512x128xf32>, vector<1x128xf32> -> vector<1x128xf32>
    %43 = arith.addf %37, %42 : vector<1x128xf32>
    %c0_56 = arith.constant 0 : index
    %c16 = arith.constant 16 : index
    %c0_57 = arith.constant 0 : index
    %44 = vector.load %arg7[%c0_56, %c16, %c0_57] : memref<1x32x512xf32, #tpu.memory_space<vmem>>, vector<1x8x512xf32>
    %cst_58 = arith.constant dense<0.000000e+00> : vector<1x512xf32>
    %45 = vector.multi_reduction <add>, %44, %cst_58 [1] : vector<1x8x512xf32> to vector<1x512xf32>
    %c2_59 = arith.constant 2 : index
    %c0_60 = arith.constant 0 : index
    %c0_61 = arith.constant 0 : index
    %46 = vector.load %arg4[%c2_59, %c0_60, %c0_61] : memref<4x512x128xf32, #tpu.memory_space<vmem>>, vector<1x512x128xf32>
    %47 = vector.shape_cast %46 : vector<1x512x128xf32> to vector<512x128xf32>
    %cst_62 = arith.constant dense<0.000000e+00> : vector<1x128xf32>
    %48 = tpu.matmul %45, %47, %cst_62 {dimension_numbers = #tpu.dot_dimension_numbers<[1], [0], [0], [1], [0, 0, 1, 1], [], []>} : vector<1x512xf32>, vector<512x128xf32>, vector<1x128xf32> -> vector<1x128xf32>
    %49 = arith.addf %43, %48 : vector<1x128xf32>
    %c0_63 = arith.constant 0 : index
    %c24 = arith.constant 24 : index
    %c0_64 = arith.constant 0 : index
    %50 = vector.load %arg7[%c0_63, %c24, %c0_64] : memref<1x32x512xf32, #tpu.memory_space<vmem>>, vector<1x8x512xf32>
    %cst_65 = arith.constant dense<0.000000e+00> : vector<1x512xf32>
    %51 = vector.multi_reduction <add>, %50, %cst_65 [1] : vector<1x8x512xf32> to vector<1x512xf32>
    %c3 = arith.constant 3 : index
    %c0_66 = arith.constant 0 : index
    %c0_67 = arith.constant 0 : index
    %52 = vector.load %arg4[%c3, %c0_66, %c0_67] : memref<4x512x128xf32, #tpu.memory_space<vmem>>, vector<1x512x128xf32>
    %53 = vector.shape_cast %52 : vector<1x512x128xf32> to vector<512x128xf32>
    %cst_68 = arith.constant dense<0.000000e+00> : vector<1x128xf32>
    %54 = tpu.matmul %51, %53, %cst_68 {dimension_numbers = #tpu.dot_dimension_numbers<[1], [0], [0], [1], [0, 0, 1, 1], [], []>} : vector<1x512xf32>, vector<512x128xf32>, vector<1x128xf32> -> vector<1x128xf32>
    %55 = arith.addf %49, %54 : vector<1x128xf32>
    %c0_69 = arith.constant 0 : index
    %c0_70 = arith.constant 0 : index
    %56 = vector.load %arg5[%c0_69, %c0_70] : memref<1x128xf32, #tpu.memory_space<vmem>>, vector<1x128xf32>
    %57 = arith.addf %55, %56 : vector<1x128xf32>
    %c0_71 = arith.constant 0 : index
    %c0_72 = arith.constant 0 : index
    %c0_73 = arith.constant 0 : index
    %58 = vector.load %arg6[%c0_71, %c0_72, %c0_73] : memref<1x1x128xf32, #tpu.memory_space<vmem>>, vector<1x1x128xf32>
    %59 = vector.shape_cast %58 : vector<1x1x128xf32> to vector<1x128xf32>
    %60 = vector.shape_cast %57 : vector<1x128xf32> to vector<1x1x128xf32>
    tpu.vector_store %arg6[%c0_71, %c0_72, %c0_73], %60 {strides = array<i32>} : memref<1x1x128xf32, #tpu.memory_space<vmem>>, vector<1x1x128xf32>,
    return
  }
  func.func @transform_0(%arg0: i32) -> (i32, i32, i32) {
    %c0_i32 = arith.constant 0 : i32
    %c0_i32_0 = arith.constant 0 : i32
    %c0_i32_1 = arith.constant 0 : i32
    return %arg0, %c0_i32, %c0_i32_0 : i32, i32, i32
  }
  func.func @transform_1(%arg0: i32) -> (i32, i32, i32) {
    %c0_i32 = arith.constant 0 : i32
    %c0_i32_0 = arith.constant 0 : i32
    %c0_i32_1 = arith.constant 0 : i32
    %c0_i32_2 = arith.constant 0 : i32
    return %c0_i32, %c0_i32_0, %c0_i32_1 : i32, i32, i32
  }
  func.func @transform_2(%arg0: i32) -> (i32, i32) {
    %c0_i32 = arith.constant 0 : i32
    %c0_i32_0 = arith.constant 0 : i32
    %c0_i32_1 = arith.constant 0 : i32
    return %c0_i32, %c0_i32_0 : i32, i32
  }
  func.func @transform_3(%arg0: i32) -> (i32, i32, i32) {
    %c0_i32 = arith.constant 0 : i32
    %c0_i32_0 = arith.constant 0 : i32
    %c0_i32_1 = arith.constant 0 : i32
    %c0_i32_2 = arith.constant 0 : i32
    return %c0_i32, %c0_i32_0, %c0_i32_1 : i32, i32, i32
  }
  func.func @transform_4(%arg0: i32) -> (i32, i32) {
    %c0_i32 = arith.constant 0 : i32
    %c0_i32_0 = arith.constant 0 : i32
    %c0_i32_1 = arith.constant 0 : i32
    return %c0_i32, %c0_i32_0 : i32, i32
  }
  func.func @transform_5(%arg0: i32) -> (i32, i32, i32) {
    %c0_i32 = arith.constant 0 : i32
    %c0_i32_0 = arith.constant 0 : i32
    %c0_i32_1 = arith.constant 0 : i32
    return %arg0, %c0_i32, %c0_i32_0 : i32, i32, i32
  }
}

</mosaic_0001>

<bundles_post_ra>
// kernel: tile.8
= control target key start
LH: loop header
LB: loop body
LE: loop exit
PB: predicated region body
PF: predicated region fallthrough
CT: control target
= control target key end

     0   :  { %s40_s0 = inlined_call_operand.vmem [shape: f32[16], index: 0, kind: input, shape index: {}]   ;;  %s41_s1 = inlined_call_operand.vmem [shape: f32[32,16], index: 1, kind: output, shape index: {}]  }
   0x1   :  { %v4_v0 = vld [vmem:[%s40_s0] ss:$0 sm:$0xff] }
   0x2   :  { %5 = vst [vmem:[%s41_s1] sm:$0xff] %v4_v0  ;;  %12 = vst [vmem:[%s41_s1 + $0x8] sm:$0xff] %v4_v0 }
   0x3   :  { %13 = vst [vmem:[%s41_s1 + $0x10] sm:$0xff] %v4_v0  ;;  %14 = vst [vmem:[%s41_s1 + $0x18] sm:$0xff] %v4_v0 }

// kernel: tile.9
= control target key start
LH: loop header
LB: loop body
LE: loop exit
PB: predicated region body
PF: predicated region fallthrough
CT: control target
= control target key end

     0   :  { %s89_s8 = smov 112   ;;  %s90_s11 = smov 80   ;;  %vm3_vm0 = vcmask 130048   ;;  %vm9_vm1 = vcmask 1048448   ;;  %vm15_vm2 = vcmask 917248   ;;  %vm21_vm3 = vcmask 786048   ;;  %s142_s0 = inlined_call_operand.vmem [shape: f32[32,16], index: 0, kind: input, shape index: {}]   ;;  %s143_s1 = inlined_call_operand.vmem [shape: f32[1,512], index: 1, kind: output, shape index: {}]  }
   0x1   :  { %v72_v0 = vld [vmem:[%s142_s0 + $0x7] ss:$8 sm:$0xf]   ;;  %v74_v1 = vld [vmem:[%s142_s0 + $0x5] ss:$8 sm:$0xf]  }
   0x2   :  { %7 = vrot.lane.b32.xlu0 %v72_v0, %s89_s8  ;;  %19 = vrot.lane.b32.xlu1 %v74_v1, %s90_s11  ;;  %v73_v2 = vld [vmem:[%s142_s0 + $0x6] ss:$8 sm:$0xf]   ;;  %v75_v3 = vld [vmem:[%s142_s0 + $0x4] ss:$8 sm:$0xf]  }
   0x3   :  { %s91_s16 = smov 96   ;;  %v2_v4 = vld [vmem:[%s142_s0] ss:$8 sm:$0xf]   ;;  %s92_s19 = smov 64   ;;  %vm27_vm4 = vcmask 654848  }
   0x4   :  { %v76_v5 = vld [vmem:[%s142_s0 + $0x3] ss:$8 sm:$0xf]   ;;  %4 = vst.msk [vmem:[#allocation0] ss:$8 sm:$0xf] %vm3_vm0, %v2_v4  }
   0x5   :  { %v77_v6 = vld [vmem:[%s142_s0 + $0x2] ss:$8 sm:$0xf]   ;;  %s93_s24 = smov 48   ;;  %s94_s25 = smov 32   ;;  %vm33_vm5 = vcmask 523648  }
   0x6   :  { %13 = vrot.lane.b32.xlu0 %v73_v2, %s91_s16  ;;  %25 = vrot.lane.b32.xlu1 %v75_v3, %s92_s19  ;;  %v78_v7 = vld [vmem:[%s142_s0 + $0x1] ss:$8 sm:$0xf]   ;;  %s95_s0 = smov 16   ;;  %vm39_vm6 = vcmask 392448   ;;  %vm45_vm7 = vcmask 261248  }
   0xa   :  { %31 = vrot.lane.b32.xlu0 %v76_v5, %s93_s24  ;;  %37 = vrot.lane.b32.xlu1 %v77_v6, %s94_s25 }
   0xe   :  { %43 = vrot.lane.b32.xlu0 %v78_v7, %s95_s0 }
  0x74   :  { %v8_v8 = vpop.permute.xlu0 %7   ;;  %v20_v9 = vpop.permute.xlu1 %19  }
  0x75   :  { %10 = vst.msk [vmem:[#allocation0] ss:$8 sm:$0xf] %vm9_vm1, %v8_v8  }
  0x78   :  { %v14_v10 = vpop.permute.xlu0 %13   ;;  %v26_v11 = vpop.permute.xlu1 %25  }
  0x79   :  { %16 = vst.msk [vmem:[#allocation0] ss:$8 sm:$0xf] %vm15_vm2, %v14_v10  }
  0x7a   :  { %22 = vst.msk [vmem:[#allocation0] ss:$8 sm:$0xf] %vm21_vm3, %v20_v9  }
  0x7b   :  { %28 = vst.msk [vmem:[#allocation0] ss:$8 sm:$0xf] %vm27_vm4, %v26_v11  }
  0x7c   :  { %v32_v12 = vpop.permute.xlu0 %31   ;;  %v38_v13 = vpop.permute.xlu1 %37  }
  0x7d   :  { %34 = vst.msk [vmem:[#allocation0] ss:$8 sm:$0xf] %vm33_vm5, %v32_v12  }
  0x7e   :  { %40 = vst.msk [vmem:[#allocation0] ss:$8 sm:$0xf] %vm39_vm6, %v38_v13  }
  0x80   :  { %v44_v14 = vpop.permute.xlu0 %43  }
  0x81   :  { %46 = vst.msk [vmem:[#allocation0] ss:$8 sm:$0xf] %vm45_vm7, %v44_v14  }
  0x88   :  { %v50_v15 = vld [vmem:[#allocation0] sm:$0x1]  ;;  %v54_v16 = vld [vmem:[#allocation0 + $0x8] sm:$0x1]  ;;  %v59_v17 = vld [vmem:[#allocation0 + $0x10] sm:$0x1] }
  0x89   :  { %52 = vst [vmem:[%s143_s1] sm:$0x1] %v50_v15  ;;  %79 = vst [vmem:[%s143_s1 + $0x1] sm:$0x1] %v54_v16  ;;  %v65_v18 = vld [vmem:[#allocation0 + $0x18] sm:$0x1] }
  0x8a   :  { %80 = vst [vmem:[%s143_s1 + $0x2] sm:$0x1] %v59_v17  ;;  %81 = vst [vmem:[%s143_s1 + $0x3] sm:$0x1] %v65_v18 }

// kernel: simple_model_forward.1
= control target key start
LH: loop header
LB: loop body
LE: loop exit
PB: predicated region body
PF: predicated region fallthrough
CT: control target
= control target key end

     0   :  { %10 = vsyncpa [#allocation4], 0  ;;  %s4942_s0 = inlined_call_operand.vmem [shape: f32[2,34,128], index: 0, kind: input, shape index: {}]   ;;  %s4943_s1 = inlined_call_operand.vmem [shape: f32[3,128,512], index: 1, kind: input, shape index: {}]   ;;  %s4944_s2 = inlined_call_operand.vmem [shape: f32[1,512], index: 2, kind: input, shape index: {}]   ;;  %s4945_s3 = inlined_call_operand.vmem [shape: f32[4,512,128], index: 3, kind: input, shape index: {}]   ;;  %s4946_s4 = inlined_call_operand.vmem [shape: f32[1,128], index: 4, kind: input, shape index: {}]   ;;  %s4947_s5 = inlined_call_operand.hbm [shape: f32[2,1,128], index: 5, kind: output, shape index: {}]  }
   0x1   :  { %12 = vsyncpa [#allocation4 + $0x1], 0  ;;  %s3389_s18 = smov 0   ;;  %s3391_s19 = smov 0  }
   0x2   :  { %s3393_s20 = smov 0   ;;  %s3395_s21 = smov 0  }
   0x3 LB: > { %s3410_s22 = sadd.s32 4294967295, %s3355_s21   ;;  %s2164_s23 = sadd.s32 4294967294, %s3355_s21   ;;  %s3355_s21 = sphi %s3395_s21, %s4953_s21   ;;  %s3351_s20 = sphi %s3393_s20, %s4952_s20   ;;  %s3347_s19 = sphi %s3391_s19, %s4951_s19   ;;  %s3343_s18 = sphi %s3389_s18, %s4950_s18  }
   0x4   : > { %s3414_s24 = sadd.s32 1, %s3355_s21   ;;  %s135_s25 = sadd.s32 1, %s3351_s20 }
   0x5   : > { %s132_s26 = ssub.s32 %s3355_s21, %s3414_s24  ;;  %p145_p0 = scmp.ne.s32.totalorder %s3351_s20, %s3347_s19 }
   0x6   : > { %p133_p1 = scmp.eq.s32.totalorder %s132_s26, 0  ;;  %p146_p2 = scmp.eq.s32.totalorder %s3410_s22, 1 }
   0x7   : > { %p151_p3 = scmp.ne.s32.totalorder %s3347_s19, %s3343_s18  ;;  %p152_p4 = scmp.eq.s32.totalorder %s2164_s23, 1 }
   0x8   : > { %s3425_s27 = scalar_select %p133_p1, %s3351_s20, %s135_s25  }
   0x9   : > { %p3427_p5 = por %p146_p2, %p145_p0  ;;  %p3431_p6 = por %p152_p4, %p151_p3 }
   0xa   : > { %p2167_p7 = scmp.ge.s32.totalorder %s3355_s21, 1  ;;  %p190_p8 = scmp.lt.s32.totalorder %s3355_s21, 3 }
   0xc   : > { %p191_p9 = pnand %p2167_p7, %p190_p8 }
   0xd   : > { %v227_v0 = vld [vmem:[%s4943_s1 + $0x8] sm:$0xff] (!%p191_p9)  ;;  %v229_v2 = vld [vmem:[%s4943_s1 + $0x18] sm:$0xff] (!%p191_p9)  ;;  %v226_v5 = vld [vmem:[%s4943_s1] sm:$0xff] (!%p191_p9)  ;;  %v3357_v7 = vmov (!%p191_p9), 0.0   ;;  %p217_p10 = scmp.lt.s32.totalorder (!%p191_p9), %s3410_s22, 1  ;;  %s215_s15 = sand.u32 (!%p191_p9), 1, %s3347_s19  }
   0xe   : > { %194 = sbr.rel (%p191_p9) target bundleno = 679 (0x2a7), region = 40  ;;  %v231_v1 = vld [vmem:[%s4943_s1 + $0x28] sm:$0xff] (!%p191_p9)  ;;  %v233_v4 = vld [vmem:[%s4943_s1 + $0x38] sm:$0xff] (!%p191_p9)  ;;  %v230_v6 = vld [vmem:[%s4943_s1 + $0x20] sm:$0xff] (!%p191_p9)  ;;  %354 = vmatprep.mubr.f32.mxu0 (!%p191_p9), %v3357_v7  ;;  %443 = vmatprep.mubr.f32.mxu1 (!%p191_p9), %v3357_v7  ;;  %s2489_s26 = sshll.u32 (!%p191_p9), %s3410_s22, 4 }
   0xf   : > { %v2772_v3 = vpack.c.bf16 (!%p191_p9), %v231_v1, %v227_v0  ;;  %v2804_v8 = vpack.c.bf16 (!%p191_p9), %v233_v4, %v229_v2  ;;  %v2774_v9 = vpack.c.bf16 (!%p191_p9), %v230_v6, %v226_v5  ;;  %v228_v10 = vld [vmem:[%s4943_s1 + $0x10] sm:$0xff] (!%p191_p9)  ;;  %v235_v12 = vld [vmem:[%s4943_s1 + $0x48] sm:$0xff] (!%p191_p9)  ;;  %v237_v15 = vld [vmem:[%s4943_s1 + $0x58] sm:$0xff] (!%p191_p9)  ;;  %s4900_s9 = scalar_lea.hbm (!%p191_p9), %s4947_s5, %s2489_s26  ;;  %s2097_s10 = scalar_lea.sflag (!%p191_p9), [#allocation4], %s215_s15 }
  0x10   : > { %v232_v11 = vld [vmem:[%s4943_s1 + $0x30] sm:$0xff] (!%p191_p9)  ;;  %v239_v14 = vld [vmem:[%s4943_s1 + $0x68] sm:$0xff] (!%p191_p9)  ;;  %v241_v16 = vld [vmem:[%s4943_s1 + $0x78] sm:$0xff] (!%p191_p9) }
  0x11   : > { %2773 = vmatprep.subr.bf16.mxu0 (!%p191_p9), %v2772_v3  ;;  %v2806_v13 = vpack.c.bf16 (!%p191_p9), %v232_v11, %v228_v10  ;;  %2805 = vmatprep.subr.bf16.mxu1 (!%p191_p9), %v2804_v8  ;;  %v2776_v17 = vpack.c.bf16 (!%p191_p9), %v239_v14, %v235_v12  ;;  %v2808_v18 = vpack.c.bf16 (!%p191_p9), %v241_v16, %v237_v15  ;;  %v234_v19 = vld [vmem:[%s4943_s1 + $0x40] sm:$0xff] (!%p191_p9)  ;;  %v236_v21 = vld [vmem:[%s4943_s1 + $0x50] sm:$0xff] (!%p191_p9)  ;;  %v243_v24 = vld [vmem:[%s4943_s1 + $0x88] sm:$0xff] (!%p191_p9) }
  0x12   : > { %2775 = vmatpush1.bf16.msra.mxu0 (!%p191_p9), %v2774_v9  ;;  %v238_v20 = vld [vmem:[%s4943_s1 + $0x60] sm:$0xff] (!%p191_p9)  ;;  %v240_v23 = vld [vmem:[%s4943_s1 + $0x70] sm:$0xff] (!%p191_p9)  ;;  %v247_v25 = vld [vmem:[%s4943_s1 + $0xa8] sm:$0xff] (!%p191_p9) }
  0x13   : > { %2807 = vmatpush1.bf16.msra.mxu1 (!%p191_p9), %v2806_v13  ;;  %v2778_v22 = vpack.c.bf16 (!%p191_p9), %v238_v20, %v234_v19  ;;  %2777 = vmatprep.subr.bf16.mxu0 (!%p191_p9), %v2776_v17  ;;  %v2810_v26 = vpack.c.bf16 (!%p191_p9), %v240_v23, %v236_v21  ;;  %v2780_v27 = vpack.c.bf16 (!%p191_p9), %v247_v25, %v243_v24  ;;  %v245_v28 = vld [vmem:[%s4943_s1 + $0x98] sm:$0xff] (!%p191_p9)  ;;  %v242_v30 = vld [vmem:[%s4943_s1 + $0x80] sm:$0xff] (!%p191_p9)  ;;  %v244_v33 = vld [vmem:[%s4943_s1 + $0x90] sm:$0xff] (!%p191_p9) }
  0x14   : > { %2809 = vmatprep.subr.bf16.mxu1 (!%p191_p9), %v2808_v18  ;;  %v249_v29 = vld [vmem:[%s4943_s1 + $0xb8] sm:$0xff] (!%p191_p9)  ;;  %v246_v32 = vld [vmem:[%s4943_s1 + $0xa0] sm:$0xff] (!%p191_p9)  ;;  %v248_v34 = vld [vmem:[%s4943_s1 + $0xb0] sm:$0xff] (!%p191_p9) }
  0x15   : > { %v2812_v31 = vpack.c.bf16 %v249_v29, %v245_v28  ;;  %v2782_v35 = vpack.c.bf16 %v246_v32, %v242_v30  ;;  %v251_v36 = vld [vmem:[%s4943_s1 + $0xc8] sm:$0xff]  ;;  %v253_v38 = vld [vmem:[%s4943_s1 + $0xd8] sm:$0xff]  ;;  %v2814_v39 = vpack.c.bf16 %v248_v34, %v244_v33  ;;  %v250_v42 = vld [vmem:[%s4943_s1 + $0xc0] sm:$0xff]  ;;  %s3608_s25 = scalar_select %p217_p10, %s3410_s22, 1 }
  0x16   : > { %2779 = vmatpush1.bf16.msra.mxu0 %v2778_v22  ;;  %v255_v37 = vld [vmem:[%s4943_s1 + $0xe8] sm:$0xff]  ;;  %v257_v41 = vld [vmem:[%s4943_s1 + $0xf8] sm:$0xff]  ;;  %v254_v43 = vld [vmem:[%s4943_s1 + $0xe0] sm:$0xff]  ;;  %s3358_s22 = smov [#allocation3]  }
  0x17   : > { %2811 = vmatpush1.bf16.msra.mxu1 %v2810_v26  ;;  %2781 = vmatprep.subr.bf16.mxu0 %v2780_v27  ;;  %v2784_v40 = vpack.c.bf16 %v255_v37, %v251_v36  ;;  %v2816_v44 = vpack.c.bf16 %v257_v41, %v253_v38  ;;  %v252_v45 = vld [vmem:[%s4943_s1 + $0xd0] sm:$0xff]  ;;  %v259_v47 = vld [vmem:[%s4943_s1 + $0x108] sm:$0xff]  ;;  %v261_v49 = vld [vmem:[%s4943_s1 + $0x118] sm:$0xff]  ;;  %v2786_v51 = vpack.c.bf16 %v254_v43, %v250_v42  ;;  %s3252_s30 = smul.u32 40, %s3608_s25 }
  0x18   : > { %2813 = vmatprep.subr.bf16.mxu1 %v2812_v31  ;;  %v256_v46 = vld [vmem:[%s4943_s1 + $0xf0] sm:$0xff]  ;;  %v263_v48 = vld [vmem:[%s4943_s1 + $0x128] sm:$0xff]  ;;  %v265_v50 = vld [vmem:[%s4943_s1 + $0x138] sm:$0xff] }
  0x19   : > { %v2818_v52 = vpack.c.bf16 %v256_v46, %v252_v45  ;;  %v2788_v53 = vpack.c.bf16 %v263_v48, %v259_v47  ;;  %v258_v54 = vld [vmem:[%s4943_s1 + $0x100] sm:$0xff]  ;;  %v260_v56 = vld [vmem:[%s4943_s1 + $0x110] sm:$0xff]  ;;  %v2820_v57 = vpack.c.bf16 %v265_v50, %v261_v49  ;;  %v267_v59 = vld [vmem:[%s4943_s1 + $0x148] sm:$0xff]  ;;  %s3653_s17 = scalar_lea.vmem %s4942_s0, %s3252_s30  ;;  %s3297_s30 = sshll.u32 %s3358_s22, 4  ;;  %s3298_s30 = int_to_ptr.vmem [resolvable:$false] %s3297_s30 }
  0x1a   : > { %2783 = vmatpush1.bf16.msra.mxu0 %v2782_v35  ;;  %v262_v55 = vld [vmem:[%s4943_s1 + $0x120] sm:$0xff]  ;;  %v264_v58 = vld [vmem:[%s4943_s1 + $0x130] sm:$0xff]  ;;  %v271_v60 = vld [vmem:[%s4943_s1 + $0x168] sm:$0xff]  ;;  %s3299_s12 = scalar_lea.vmem %s3298_s30, 32 }
  0x1b   : > { %2815 = vmatpush1.bf16.msra.mxu1 %v2814_v39  ;;  %2785 = vmatprep.subr.bf16.mxu0 %v2784_v40  ;;  %v269_v61 = vld [vmem:[%s4943_s1 + $0x158] sm:$0xff]  ;;  %v2790_v63 = vpack.c.bf16 %v262_v55, %v258_v54  ;;  %v2822_v0 = vpack.c.bf16 %v264_v58, %v260_v56  ;;  %v2792_v1 = vpack.c.bf16 %v271_v60, %v267_v59  ;;  %v266_v2 = vld [vmem:[%s4943_s1 + $0x140] sm:$0xff]  ;;  %v268_v4 = vld [vmem:[%s4943_s1 + $0x150] sm:$0xff] }
  0x1c   : > { %2817 = vmatprep.subr.bf16.mxu1 %v2816_v44  ;;  %v273_v62 = vld [vmem:[%s4943_s1 + $0x178] sm:$0xff]  ;;  %v270_v3 = vld [vmem:[%s4943_s1 + $0x160] sm:$0xff]  ;;  %v272_v6 = vld [vmem:[%s4943_s1 + $0x170] sm:$0xff] }
  0x1d   : > { %v2824_v5 = vpack.c.bf16 %v273_v62, %v269_v61  ;;  %v275_v8 = vld [vmem:[%s4943_s1 + $0x188] sm:$0xff]  ;;  %v277_v10 = vld [vmem:[%s4943_s1 + $0x198] sm:$0xff]  ;;  %v2794_v12 = vpack.c.bf16 %v270_v3, %v266_v2  ;;  %v2826_v13 = vpack.c.bf16 %v272_v6, %v268_v4  ;;  %v274_v15 = vld [vmem:[%s4943_s1 + $0x180] sm:$0xff] }
  0x1e   : > { %2787 = vmatpush1.bf16.msra.mxu0 %v2786_v51  ;;  %v279_v9 = vld [vmem:[%s4943_s1 + $0x1a8] sm:$0xff]  ;;  %v281_v11 = vld [vmem:[%s4943_s1 + $0x1b8] sm:$0xff]  ;;  %v278_v16 = vld [vmem:[%s4943_s1 + $0x1a0] sm:$0xff] }
  0x1f   : > { %2819 = vmatpush1.bf16.msra.mxu1 %v2818_v52  ;;  %2789 = vmatprep.subr.bf16.mxu0 %v2788_v53  ;;  %v2796_v14 = vpack.c.bf16 %v279_v9, %v275_v8  ;;  %v276_v17 = vld [vmem:[%s4943_s1 + $0x190] sm:$0xff]  ;;  %v2828_v18 = vpack.c.bf16 %v281_v11, %v277_v10  ;;  %v283_v20 = vld [vmem:[%s4943_s1 + $0x1c8] sm:$0xff]  ;;  %v285_v22 = vld [vmem:[%s4943_s1 + $0x1d8] sm:$0xff]  ;;  %v2798_v24 = vpack.c.bf16 %v278_v16, %v274_v15 }
  0x20   : > { %2821 = vmatprep.subr.bf16.mxu1 %v2820_v57  ;;  %v280_v19 = vld [vmem:[%s4943_s1 + $0x1b0] sm:$0xff]  ;;  %v287_v21 = vld [vmem:[%s4943_s1 + $0x1e8] sm:$0xff]  ;;  %v289_v23 = vld [vmem:[%s4943_s1 + $0x1f8] sm:$0xff] }
  0x21   : > { %v2830_v25 = vpack.c.bf16 %v280_v19, %v276_v17  ;;  %v2800_v26 = vpack.c.bf16 %v287_v21, %v283_v20  ;;  %v282_v27 = vld [vmem:[%s4943_s1 + $0x1c0] sm:$0xff]  ;;  %v284_v29 = vld [vmem:[%s4943_s1 + $0x1d0] sm:$0xff]  ;;  %v2832_v30 = vpack.c.bf16 %v289_v23, %v285_v22  ;;  %v2170_v32 = vld [vmem:[%s4943_s1 + $0x208] sm:$0xff] }
  0x22   : > { %2791 = vmatpush1.bf16.msra.mxu0 %v2790_v63  ;;  %v286_v28 = vld [vmem:[%s4943_s1 + $0x1e0] sm:$0xff]  ;;  %v288_v31 = vld [vmem:[%s4943_s1 + $0x1f0] sm:$0xff]  ;;  %v2174_v33 = vld [vmem:[%s4943_s1 + $0x228] sm:$0xff] }
  0x23   : > { %2823 = vmatpush1.bf16.msra.mxu1 %v2822_v0  ;;  %2793 = vmatprep.subr.bf16.mxu0 %v2792_v1  ;;  %v2172_v34 = vld [vmem:[%s4943_s1 + $0x218] sm:$0xff]  ;;  %v2802_v36 = vpack.c.bf16 %v286_v28, %v282_v27  ;;  %v2834_v37 = vpack.c.bf16 %v288_v31, %v284_v29  ;;  %v2836_v38 = vpack.c.bf16 %v2174_v33, %v2170_v32  ;;  %v2169_v39 = vld [vmem:[%s4943_s1 + $0x200] sm:$0xff]  ;;  %v2171_v41 = vld [vmem:[%s4943_s1 + $0x210] sm:$0xff] }
  0x24   : > { %2825 = vmatprep.subr.bf16.mxu1 %v2824_v5  ;;  %v2176_v35 = vld [vmem:[%s4943_s1 + $0x238] sm:$0xff]  ;;  %v2173_v40 = vld [vmem:[%s4943_s1 + $0x220] sm:$0xff]  ;;  %v2175_v43 = vld [vmem:[%s4943_s1 + $0x230] sm:$0xff] }
  0x25   : > { %v2868_v42 = vpack.c.bf16 %v2176_v35, %v2172_v34  ;;  %v2178_v44 = vld [vmem:[%s4943_s1 + $0x248] sm:$0xff]  ;;  %v2180_v46 = vld [vmem:[%s4943_s1 + $0x258] sm:$0xff]  ;;  %v222_v48 = vld [vmem:[%s3653_s17] sm:$0xff]  ;;  %v2838_v49 = vpack.c.bf16 %v2173_v40, %v2169_v39  ;;  %v2870_v50 = vpack.c.bf16 %v2175_v43, %v2171_v41 }
  0x26   : > { %2795 = vmatpush1.bf16.msra.mxu0 %v2794_v12  ;;  %v2182_v45 = vld [vmem:[%s4943_s1 + $0x268] sm:$0xff]  ;;  %v2184_v47 = vld [vmem:[%s4943_s1 + $0x278] sm:$0xff]  ;;  %v2177_v52 = vld [vmem:[%s4943_s1 + $0x240] sm:$0xff] }
  0x27   : > { %2827 = vmatpush1.bf16.msra.mxu1 %v2826_v13  ;;  %2797 = vmatprep.subr.bf16.mxu0 %v2796_v14  ;;  %v2840_v51 = vpack.c.bf16 %v2182_v45, %v2178_v44  ;;  %v2181_v53 = vld [vmem:[%s4943_s1 + $0x260] sm:$0xff]  ;;  %v2179_v54 = vld [vmem:[%s4943_s1 + $0x250] sm:$0xff]  ;;  %v2872_v55 = vpack.c.bf16 %v2184_v47, %v2180_v46  ;;  %v2186_v57 = vld [vmem:[%s4943_s1 + $0x288] sm:$0xff] }
  0x28   : > { %2829 = vmatprep.subr.bf16.mxu1 %v2828_v18  ;;  %v2183_v56 = vld [vmem:[%s4943_s1 + $0x270] sm:$0xff]  ;;  %v2190_v58 = vld [vmem:[%s4943_s1 + $0x2a8] sm:$0xff]  ;;  %v2188_v59 = vld [vmem:[%s4943_s1 + $0x298] sm:$0xff]  ;;  %v2842_v61 = vpack.c.bf16 %v2181_v53, %v2177_v52 }
  0x29   : > { %v2192_v60 = vld [vmem:[%s4943_s1 + $0x2b8] sm:$0xff]  ;;  %v223_v62 = vld [vmem:[%s3653_s17 + $0x8] sm:$0xff]  ;;  %v2874_v63 = vpack.c.bf16 %v2183_v56, %v2179_v54  ;;  %v2844_v0 = vpack.c.bf16 %v2190_v58, %v2186_v57  ;;  %v2185_v1 = vld [vmem:[%s4943_s1 + $0x280] sm:$0xff] }
  0x2a   : > { %2799 = vmatpush1.bf16.msra.mxu0 %v2798_v24  ;;  %v2189_v2 = vld [vmem:[%s4943_s1 + $0x2a0] sm:$0xff]  ;;  %v2187_v3 = vld [vmem:[%s4943_s1 + $0x290] sm:$0xff]  ;;  %v2876_v4 = vpack.c.bf16 %v2192_v60, %v2188_v59  ;;  %v2194_v6 = vld [vmem:[%s4943_s1 + $0x2c8] sm:$0xff] }
  0x2b   : > { %2831 = vmatpush1.bf16.msra.mxu1 %v2830_v25  ;;  %2801 = vmatprep.subr.bf16.mxu0 %v2800_v26  ;;  %v2191_v5 = vld [vmem:[%s4943_s1 + $0x2b0] sm:$0xff]  ;;  %v2198_v8 = vld [vmem:[%s4943_s1 + $0x2e8] sm:$0xff]  ;;  %v2196_v9 = vld [vmem:[%s4943_s1 + $0x2d8] sm:$0xff]  ;;  %v2846_v11 = vpack.c.bf16 %v2189_v2, %v2185_v1 }
  0x2c   : > { %2833 = vmatprep.subr.bf16.mxu1 %v2832_v30  ;;  %v2200_v10 = vld [vmem:[%s4943_s1 + $0x2f8] sm:$0xff]  ;;  %v224_v12 = vld [vmem:[%s3653_s17 + $0x10] sm:$0xff]  ;;  %v2878_v13 = vpack.c.bf16 %v2191_v5, %v2187_v3  ;;  %v2848_v14 = vpack.c.bf16 %v2198_v8, %v2194_v6  ;;  %v2193_v15 = vld [vmem:[%s4943_s1 + $0x2c0] sm:$0xff] }
  0x2d   : > { %v2197_v16 = vld [vmem:[%s4943_s1 + $0x2e0] sm:$0xff]  ;;  %v2195_v17 = vld [vmem:[%s4943_s1 + $0x2d0] sm:$0xff]  ;;  %v2880_v18 = vpack.c.bf16 %v2200_v10, %v2196_v9  ;;  %v2202_v20 = vld [vmem:[%s4943_s1 + $0x308] sm:$0xff] }
  0x2e   : > { %2803 = vmatpush1.bf16.msra.mxu0 %v2802_v36  ;;  %v2199_v19 = vld [vmem:[%s4943_s1 + $0x2f0] sm:$0xff]  ;;  %v2206_v21 = vld [vmem:[%s4943_s1 + $0x328] sm:$0xff]  ;;  %v2204_v22 = vld [vmem:[%s4943_s1 + $0x318] sm:$0xff]  ;;  %v2850_v24 = vpack.c.bf16 %v2197_v16, %v2193_v15 }
  0x2f   : > { %2835 = vmatpush1.bf16.msra.mxu1 %v2834_v37  ;;  %2837 = vmatprep.subr.bf16.mxu0 %v2836_v38  ;;  %v2208_v23 = vld [vmem:[%s4943_s1 + $0x338] sm:$0xff]  ;;  %v2882_v26 = vpack.c.bf16 %v2199_v19, %v2195_v17  ;;  %v2852_v27 = vpack.c.bf16 %v2206_v21, %v2202_v20  ;;  %v2201_v28 = vld [vmem:[%s4943_s1 + $0x300] sm:$0xff]  ;;  %v2203_v30 = vld [vmem:[%s4943_s1 + $0x310] sm:$0xff] }
  0x30   : > { %2869 = vmatprep.subr.bf16.mxu1 %v2868_v42  ;;  %v225_v25 = vld [vmem:[%s3653_s17 + $0x18] sm:$0xff]  ;;  %v2205_v29 = vld [vmem:[%s4943_s1 + $0x320] sm:$0xff]  ;;  %v2884_v31 = vpack.c.bf16 %v2208_v23, %v2204_v22  ;;  %v2207_v32 = vld [vmem:[%s4943_s1 + $0x330] sm:$0xff] }
  0x31   : > { %355 = vmatmul.mubr.f32.vlgmr.msra.gmra.mrb[0].mxu0 %v222_v48  ;;  %v2210_v33 = vld [vmem:[%s4943_s1 + $0x348] sm:$0xff]  ;;  %v2212_v35 = vld [vmem:[%s4943_s1 + $0x358] sm:$0xff]  ;;  %v2854_v37 = vpack.c.bf16 %v2205_v29, %v2201_v28  ;;  %v2886_v38 = vpack.c.bf16 %v2207_v32, %v2203_v30  ;;  %v2209_v40 = vld [vmem:[%s4943_s1 + $0x340] sm:$0xff] }
  0x32   : > { %444 = vmatmul.mubr.f32.vlgmr.msra.gmra.mrb[0].mxu1 %v222_v48  ;;  %2839 = vmatpush1.bf16.msra.mxu0 %v2838_v49  ;;  %v2214_v34 = vld [vmem:[%s4943_s1 + $0x368] sm:$0xff]  ;;  %v2216_v36 = vld [vmem:[%s4943_s1 + $0x378] sm:$0xff]  ;;  %v2213_v41 = vld [vmem:[%s4943_s1 + $0x360] sm:$0xff] }
  0x33   : > { %2871 = vmatpush1.bf16.msra.mxu1 %v2870_v50  ;;  %2841 = vmatprep.subr.bf16.mxu0 %v2840_v51  ;;  %v2856_v39 = vpack.c.bf16 %v2214_v34, %v2210_v33  ;;  %v2211_v42 = vld [vmem:[%s4943_s1 + $0x350] sm:$0xff]  ;;  %v2888_v43 = vpack.c.bf16 %v2216_v36, %v2212_v35  ;;  %v2218_v45 = vld [vmem:[%s4943_s1 + $0x388] sm:$0xff]  ;;  %v2220_v47 = vld [vmem:[%s4943_s1 + $0x398] sm:$0xff]  ;;  %v2858_v49 = vpack.c.bf16 %v2213_v41, %v2209_v40 }
  0x34   : > { %2873 = vmatprep.subr.bf16.mxu1 %v2872_v55  ;;  %360 = vmatprep.mubr.f32.mxu0 %v3357_v7  ;;  %v2215_v44 = vld [vmem:[%s4943_s1 + $0x370] sm:$0xff]  ;;  %v2222_v46 = vld [vmem:[%s4943_s1 + $0x3a8] sm:$0xff]  ;;  %v2224_v48 = vld [vmem:[%s4943_s1 + $0x3b8] sm:$0xff] }
  0x35   : > { %449 = vmatprep.mubr.f32.mxu1 %v3357_v7  ;;  %361 = vmatmul.mubr.f32.gmra.mrb[2].mxu0 %v223_v62  ;;  %v2890_v50 = vpack.c.bf16 %v2215_v44, %v2211_v42  ;;  %v2860_v51 = vpack.c.bf16 %v2222_v46, %v2218_v45  ;;  %v2217_v52 = vld [vmem:[%s4943_s1 + $0x380] sm:$0xff]  ;;  %v2219_v54 = vld [vmem:[%s4943_s1 + $0x390] sm:$0xff]  ;;  %v2892_v55 = vpack.c.bf16 %v2224_v48, %v2220_v47  ;;  %v2226_v57 = vld [vmem:[%s4943_s1 + $0x3c8] sm:$0xff] }
  0x36   : > { %2843 = vmatpush1.bf16.msra.mxu0 %v2842_v61  ;;  %450 = vmatmul.mubr.f32.gmra.mrb[2].mxu1 %v223_v62  ;;  %v2221_v53 = vld [vmem:[%s4943_s1 + $0x3a0] sm:$0xff]  ;;  %v2223_v56 = vld [vmem:[%s4943_s1 + $0x3b0] sm:$0xff]  ;;  %v2230_v58 = vld [vmem:[%s4943_s1 + $0x3e8] sm:$0xff] }
  0x37   : > { %2875 = vmatpush1.bf16.msra.mxu1 %v2874_v63  ;;  %2845 = vmatprep.subr.bf16.mxu0 %v2844_v0  ;;  %v2228_v59 = vld [vmem:[%s4943_s1 + $0x3d8] sm:$0xff]  ;;  %v2862_v61 = vpack.c.bf16 %v2221_v53, %v2217_v52  ;;  %v2894_v62 = vpack.c.bf16 %v2223_v56, %v2219_v54  ;;  %v2864_v63 = vpack.c.bf16 %v2230_v58, %v2226_v57  ;;  %v2225_v0 = vld [vmem:[%s4943_s1 + $0x3c0] sm:$0xff]  ;;  %v2227_v2 = vld [vmem:[%s4943_s1 + $0x3d0] sm:$0xff] }
  0x38   : > { %2877 = vmatprep.subr.bf16.mxu1 %v2876_v4  ;;  %366 = vmatprep.mubr.f32.mxu0 %v3357_v7  ;;  %v2232_v60 = vld [vmem:[%s4943_s1 + $0x3f8] sm:$0xff]  ;;  %v2229_v1 = vld [vmem:[%s4943_s1 + $0x3e0] sm:$0xff]  ;;  %v2231_v4 = vld [vmem:[%s4943_s1 + $0x3f0] sm:$0xff] }
  0x39   : > { %455 = vmatprep.mubr.f32.mxu1 %v3357_v7  ;;  %367 = vmatmul.mubr.f32.gmra.mrb[4].mxu0 %v224_v12  ;;  %v2896_v3 = vpack.c.bf16 %v2232_v60, %v2228_v59  ;;  %v2234_v5 = vld [vmem:[%s4943_s1 + $0x408] sm:$0xff]  ;;  %v2236_v8 = vld [vmem:[%s4943_s1 + $0x418] sm:$0xff]  ;;  %v2866_v10 = vpack.c.bf16 %v2229_v1, %v2225_v0  ;;  %v2235_v15 = vld [vmem:[%s4943_s1 + $0x410] sm:$0xff] }
  0x3a   : > { %2847 = vmatpush1.bf16.msra.mxu0 %v2846_v11  ;;  %456 = vmatmul.mubr.f32.gmra.mrb[4].mxu1 %v224_v12  ;;  %v2238_v6 = vld [vmem:[%s4943_s1 + $0x428] sm:$0xff]  ;;  %v2240_v9 = vld [vmem:[%s4943_s1 + $0x438] sm:$0xff]  ;;  %v2898_v11 = vpack.c.bf16 %v2231_v4, %v2227_v2  ;;  %v2239_v17 = vld [vmem:[%s4943_s1 + $0x430] sm:$0xff] }
  0x3b   : > { %2879 = vmatpush1.bf16.msra.mxu1 %v2878_v13  ;;  %2849 = vmatprep.subr.bf16.mxu0 %v2848_v14  ;;  %v2900_v12 = vpack.c.bf16 %v2238_v6, %v2234_v5  ;;  %v2233_v13 = vld [vmem:[%s4943_s1 + $0x400] sm:$0xff]  ;;  %v2932_v16 = vpack.c.bf16 %v2240_v9, %v2236_v8  ;;  %v2246_v19 = vld [vmem:[%s4943_s1 + $0x468] sm:$0xff]  ;;  %v2244_v20 = vld [vmem:[%s4943_s1 + $0x458] sm:$0xff] }
  0x3c   : > { %2881 = vmatprep.subr.bf16.mxu1 %v2880_v18  ;;  %372 = vmatprep.mubr.f32.mxu0 %v3357_v7  ;;  %v2237_v14 = vld [vmem:[%s4943_s1 + $0x420] sm:$0xff]  ;;  %v2242_v18 = vld [vmem:[%s4943_s1 + $0x448] sm:$0xff]  ;;  %v2248_v21 = vld [vmem:[%s4943_s1 + $0x478] sm:$0xff] }
  0x3d   : > { %461 = vmatprep.mubr.f32.mxu1 %v3357_v7  ;;  %373 = vmatmul.mubr.f32.gmra.mrb[6].mxu0 %v225_v25  ;;  %v484_v22 = vld [vmem:[%s3653_s17 + $0x1] sm:$0xff]  ;;  %v2902_v23 = vpack.c.bf16 %v2237_v14, %v2233_v13  ;;  %v2243_v28 = vld [vmem:[%s4943_s1 + $0x450] sm:$0xff]  ;;  %v2936_v29 = vpack.c.bf16 %v2248_v21, %v2244_v20  ;;  %v2252_v33 = vld [vmem:[%s4943_s1 + $0x498] sm:$0xff] }
  0x3e   : > { %2851 = vmatpush1.bf16.msra.mxu0 %v2850_v24  ;;  %462 = vmatmul.mubr.f32.gmra.mrb[6].mxu1 %v225_v25  ;;  %v2934_v24 = vpack.c.bf16 %v2239_v17, %v2235_v15  ;;  %v2904_v25 = vpack.c.bf16 %v2246_v19, %v2242_v18  ;;  %v2247_v30 = vld [vmem:[%s4943_s1 + $0x470] sm:$0xff]  ;;  %v2254_v32 = vld [vmem:[%s4943_s1 + $0x4a8] sm:$0xff]  ;;  %v2256_v34 = vld [vmem:[%s4943_s1 + $0x4b8] sm:$0xff] }
  0x3f   : > { %2883 = vmatpush1.bf16.msra.mxu1 %v2882_v26  ;;  %2853 = vmatprep.subr.bf16.mxu0 %v2852_v27  ;;  %v2241_v26 = vld [vmem:[%s4943_s1 + $0x440] sm:$0xff]  ;;  %v485_v36 = vld [vmem:[%s3653_s17 + $0x9] sm:$0xff]  ;;  %v2940_v42 = vpack.c.bf16 %v2256_v34, %v2252_v33  ;;  %v2260_v46 = vld [vmem:[%s4943_s1 + $0x4d8] sm:$0xff] }
  0x40   : > { %2885 = vmatprep.subr.bf16.mxu1 %v2884_v31  ;;  %617 = vmatprep.mubr.f32.mxu0 %v3357_v7  ;;  %v2245_v27 = vld [vmem:[%s4943_s1 + $0x460] sm:$0xff]  ;;  %v2250_v31 = vld [vmem:[%s4943_s1 + $0x488] sm:$0xff]  ;;  %v2251_v41 = vld [vmem:[%s4943_s1 + $0x490] sm:$0xff] }
  0x41   : > { %706 = vmatprep.mubr.f32.mxu1 %v3357_v7  ;;  %v2906_v35 = vpack.c.bf16 %v2245_v27, %v2241_v26  ;;  %v2253_v40 = vld [vmem:[%s4943_s1 + $0x4a0] sm:$0xff]  ;;  %v2258_v44 = vld [vmem:[%s4943_s1 + $0x4c8] sm:$0xff]  ;;  %v2264_v47 = vld [vmem:[%s4943_s1 + $0x4f8] sm:$0xff] }
  0x42   : > { %2855 = vmatpush1.bf16.msra.mxu0 %v2854_v37  ;;  %v2938_v37 = vpack.c.bf16 %v2247_v30, %v2243_v28  ;;  %v2262_v45 = vld [vmem:[%s4943_s1 + $0x4e8] sm:$0xff]  ;;  %v2257_v52 = vld [vmem:[%s4943_s1 + $0x4c0] sm:$0xff]  ;;  %v2259_v54 = vld [vmem:[%s4943_s1 + $0x4d0] sm:$0xff] }
  0x43   : > { %2887 = vmatpush1.bf16.msra.mxu1 %v2886_v38  ;;  %2857 = vmatprep.subr.bf16.mxu0 %v2856_v39  ;;  %v2908_v38 = vpack.c.bf16 %v2254_v32, %v2250_v31  ;;  %v2249_v39 = vld [vmem:[%s4943_s1 + $0x480] sm:$0xff]  ;;  %v2263_v56 = vld [vmem:[%s4943_s1 + $0x4f0] sm:$0xff]  ;;  %v2266_v57 = vld [vmem:[%s4943_s1 + $0x508] sm:$0xff] }
  0x44   : > { %2889 = vmatprep.subr.bf16.mxu1 %v2888_v43  ;;  %v2255_v43 = vld [vmem:[%s4943_s1 + $0x4b0] sm:$0xff]  ;;  %v2910_v48 = vpack.c.bf16 %v2253_v40, %v2249_v39  ;;  %v2261_v53 = vld [vmem:[%s4943_s1 + $0x4e0] sm:$0xff]  ;;  %v2270_v58 = vld [vmem:[%s4943_s1 + $0x528] sm:$0xff] }
  0x45   : > { %v2268_v59 = vld [vmem:[%s4943_s1 + $0x518] sm:$0xff]  ;;  %v2916_v0 = vpack.c.bf16 %v2270_v58, %v2266_v57  ;;  %v2265_v1 = vld [vmem:[%s4943_s1 + $0x500] sm:$0xff]  ;;  %v2271_v5 = vld [vmem:[%s4943_s1 + $0x530] sm:$0xff] }
  0x46   : > { %2859 = vmatpush1.bf16.msra.mxu0 %v2858_v49  ;;  %v486_v49 = vld [vmem:[%s3653_s17 + $0x11] sm:$0xff]  ;;  %v2269_v2 = vld [vmem:[%s4943_s1 + $0x520] sm:$0xff]  ;;  %v2274_v6 = vld [vmem:[%s4943_s1 + $0x548] sm:$0xff] }
  0x47   : > { %2891 = vmatpush1.bf16.msra.mxu1 %v2890_v50  ;;  %2861 = vmatprep.subr.bf16.mxu0 %v2860_v51  ;;  %v2942_v50 = vpack.c.bf16 %v2255_v43, %v2251_v41  ;;  %v2912_v51 = vpack.c.bf16 %v2262_v45, %v2258_v44  ;;  %v2272_v60 = vld [vmem:[%s4943_s1 + $0x538] sm:$0xff]  ;;  %v2278_v8 = vld [vmem:[%s4943_s1 + $0x568] sm:$0xff]  ;;  %v2273_v14 = vld [vmem:[%s4943_s1 + $0x540] sm:$0xff] }
  0x48   : > { %2893 = vmatprep.subr.bf16.mxu1 %v2892_v55  ;;  %v2944_v55 = vpack.c.bf16 %v2264_v47, %v2260_v46  ;;  %v2948_v4 = vpack.c.bf16 %v2272_v60, %v2268_v59  ;;  %v2276_v9 = vld [vmem:[%s4943_s1 + $0x558] sm:$0xff]  ;;  %v2920_v13 = vpack.c.bf16 %v2278_v8, %v2274_v6  ;;  %v2277_v15 = vld [vmem:[%s4943_s1 + $0x560] sm:$0xff]  ;;  %v2279_v18 = vld [vmem:[%s4943_s1 + $0x570] sm:$0xff] }
  0x49   : > { %v2282_v19 = vld [vmem:[%s4943_s1 + $0x588] sm:$0xff]  ;;  %v2284_v21 = vld [vmem:[%s4943_s1 + $0x598] sm:$0xff]  ;;  %v2281_v26 = vld [vmem:[%s4943_s1 + $0x580] sm:$0xff] }
  0x4a   : > { %2863 = vmatpush1.bf16.msra.mxu0 %v2862_v61  ;;  %v2914_v61 = vpack.c.bf16 %v2261_v53, %v2257_v52  ;;  %v2286_v20 = vld [vmem:[%s4943_s1 + $0x5a8] sm:$0xff]  ;;  %v2285_v27 = vld [vmem:[%s4943_s1 + $0x5a0] sm:$0xff]  ;;  %v2283_v28 = vld [vmem:[%s4943_s1 + $0x590] sm:$0xff] }
  0x4b   : > { %2895 = vmatpush1.bf16.msra.mxu1 %v2894_v62  ;;  %2865 = vmatprep.subr.bf16.mxu0 %v2864_v63  ;;  %v487_v62 = vld [vmem:[%s3653_s17 + $0x19] sm:$0xff]  ;;  %v2946_v63 = vpack.c.bf16 %v2263_v56, %v2259_v54  ;;  %v2287_v30 = vld [vmem:[%s4943_s1 + $0x5b0] sm:$0xff]  ;;  %v2290_v31 = vld [vmem:[%s4943_s1 + $0x5c8] sm:$0xff] }
  0x4c   : > { %2897 = vmatprep.subr.bf16.mxu1 %v2896_v3  ;;  %v2267_v3 = vld [vmem:[%s4943_s1 + $0x510] sm:$0xff]  ;;  %v2294_v32 = vld [vmem:[%s4943_s1 + $0x5e8] sm:$0xff]  ;;  %v2292_v33 = vld [vmem:[%s4943_s1 + $0x5d8] sm:$0xff] }
  0x4d   : > { %v2296_v34 = vld [vmem:[%s4943_s1 + $0x5f8] sm:$0xff]  ;;  %v2293_v39 = vld [vmem:[%s4943_s1 + $0x5e0] sm:$0xff]  ;;  %v2291_v40 = vld [vmem:[%s4943_s1 + $0x5d0] sm:$0xff] }
  0x4e   : > { %2867 = vmatpush1.bf16.msra.mxu0 %v2866_v10  ;;  %v2280_v10 = vld [vmem:[%s4943_s1 + $0x578] sm:$0xff]  ;;  %v2960_v41 = vpack.c.bf16 %v2296_v34, %v2292_v33  ;;  %v2313_v43 = vld [vmem:[%s4945_s3 + $0x280] sm:$0xff]  ;;  %v2314_v44 = vld [vmem:[%s4945_s3 + $0x288] sm:$0xff] }
  0x4f   : > { %2899 = vmatpush1.bf16.msra.mxu1 %v2898_v11  ;;  %2901 = vmatprep.subr.bf16.mxu0 %v2900_v12  ;;  %v2918_v11 = vpack.c.bf16 %v2269_v2, %v2265_v1  ;;  %v2950_v12 = vpack.c.bf16 %v2271_v5, %v2267_v3  ;;  %v2952_v17 = vpack.c.bf16 %v2280_v10, %v2276_v9  ;;  %v2345_v45 = vld [vmem:[%s4945_s3 + $0x380] sm:$0xff]  ;;  %v2346_v46 = vld [vmem:[%s4945_s3 + $0x388] sm:$0xff]  ;;  %v2316_v56 = vld [vmem:[%s4945_s3 + $0x298] sm:$0xff] }
  0x50   : > { %2933 = vmatprep.subr.bf16.mxu1 %v2932_v16  ;;  %v2275_v16 = vld [vmem:[%s4943_s1 + $0x550] sm:$0xff]  ;;  %v2298_v52 = vld [vmem:[%s4945_s3 + $0x208] sm:$0xff]  ;;  %v2329_v53 = vld [vmem:[%s4945_s3 + $0x300] sm:$0xff] }
  0x51   : > { %618 = vmatmul.mubr.f32.vlgmr.msra.gmra.mrb[0].mxu0 %v484_v22  ;;  %v2330_v54 = vld [vmem:[%s4945_s3 + $0x308] sm:$0xff]  ;;  %v2347_v58 = vld [vmem:[%s4945_s3 + $0x390] sm:$0xff]  ;;  %v2348_v59 = vld [vmem:[%s4945_s3 + $0x398] sm:$0xff] }
  0x52   : > { %707 = vmatmul.mubr.f32.vlgmr.msra.gmra.mrb[0].mxu1 %v484_v22  ;;  %2903 = vmatpush1.bf16.msra.mxu0 %v2902_v23  ;;  %v2288_v22 = vld [vmem:[%s4943_s1 + $0x5b8] sm:$0xff]  ;;  %v2922_v23 = vpack.c.bf16 %v2277_v15, %v2273_v14  ;;  %v779_v57 = vld [vmem:[%s3653_s17 + $0x2] sm:$0xff]  ;;  %v2331_v1 = vld [vmem:[%s4945_s3 + $0x310] sm:$0xff]  ;;  %v3000_v2 = vpack.c.bf16 %v2348_v59, %v2347_v58 }
  0x53   : > { %2935 = vmatpush1.bf16.msra.mxu1 %v2934_v24  ;;  %2905 = vmatprep.subr.bf16.mxu0 %v2904_v25  ;;  %v2954_v24 = vpack.c.bf16 %v2279_v18, %v2275_v16  ;;  %v2924_v25 = vpack.c.bf16 %v2286_v20, %v2282_v19  ;;  %v2332_v3 = vld [vmem:[%s4945_s3 + $0x318] sm:$0xff]  ;;  %v2318_v5 = vld [vmem:[%s4945_s3 + $0x2a8] sm:$0xff]  ;;  %v2349_v8 = vld [vmem:[%s4945_s3 + $0x3a0] sm:$0xff] }
  0x54   : > { %2937 = vmatprep.subr.bf16.mxu1 %v2936_v29  ;;  %623 = vmatprep.mubr.f32.mxu0 %v3357_v7  ;;  %v2956_v29 = vpack.c.bf16 %v2288_v22, %v2284_v21  ;;  %v780_v6 = vld [vmem:[%s3653_s17 + $0xa] sm:$0xff]  ;;  %v2333_v16 = vld [vmem:[%s4945_s3 + $0x320] sm:$0xff]  ;;  %v781_v18 = vld [vmem:[%s3653_s17 + $0x12] sm:$0xff] }
  0x55   : > { %712 = vmatprep.mubr.f32.mxu1 %v3357_v7  ;;  %624 = vmatmul.mubr.f32.gmra.mrb[2].mxu0 %v485_v36  ;;  %v2350_v9 = vld [vmem:[%s4945_s3 + $0x3a8] sm:$0xff]  ;;  %v782_v21 = vld [vmem:[%s3653_s17 + $0x1a] sm:$0xff]  ;;  %v2319_v22 = vld [vmem:[%s4945_s3 + $0x2b0] sm:$0xff]  ;;  %s216_s17 = scalar_lea.vmem [#allocation3], %s215_s15 }
  0x56   : > { %2907 = vmatpush1.bf16.msra.mxu0 %v2906_v35  ;;  %713 = vmatmul.mubr.f32.gmra.mrb[2].mxu1 %v485_v36  ;;  %v2926_v35 = vpack.c.bf16 %v2285_v27, %v2281_v26  ;;  %v2958_v36 = vpack.c.bf16 %v2287_v30, %v2283_v28  ;;  %v2302_v14 = vld [vmem:[%s4945_s3 + $0x228] sm:$0xff]  ;;  %v3004_v15 = vpack.c.bf16 %v2350_v9, %v2349_v8  ;;  %v2303_v26 = vld [vmem:[%s4945_s3 + $0x230] sm:$0xff]  ;;  %v2304_v27 = vld [vmem:[%s4945_s3 + $0x238] sm:$0xff]  ;;  %s2109_s6 = sshll.u32 %s216_s17, 4  ;;  %s4902_s6 = int_to_ptr.vmem [resolvable:$true] %s2109_s6 }
  0x57   : > { %2939 = vmatpush1.bf16.msra.mxu1 %v2938_v37  ;;  %2909 = vmatprep.subr.bf16.mxu0 %v2908_v38  ;;  %v2928_v37 = vpack.c.bf16 %v2294_v32, %v2290_v31  ;;  %v2289_v38 = vld [vmem:[%s4943_s1 + $0x5c0] sm:$0xff]  ;;  %v2335_v30 = vld [vmem:[%s4945_s3 + $0x330] sm:$0xff]  ;;  %v2336_v31 = vld [vmem:[%s4945_s3 + $0x338] sm:$0xff]  ;;  %s3293_s11 = scalar_lea.vmem %s4902_s6, 16  ;;  %p3300_p0 = scmp.lt.s32.totalorder %s4902_s6, %s3298_s30 }
  0x58   : > { %2941 = vmatprep.subr.bf16.mxu1 %v2940_v42  ;;  %629 = vmatprep.mubr.f32.mxu0 %v3357_v7  ;;  %v2295_v42 = vld [vmem:[%s4943_s1 + $0x5f0] sm:$0xff]  ;;  %v2930_v47 = vpack.c.bf16 %v2293_v39, %v2289_v38  ;;  %v3010_v32 = vpack.c.bf16 %v2336_v31, %v2335_v30  ;;  %v2321_v33 = vld [vmem:[%s4945_s3 + $0x2c0] sm:$0xff]  ;;  %v2322_v34 = vld [vmem:[%s4945_s3 + $0x2c8] sm:$0xff]  ;;  %p3294_p11 = scmp.ne.s32.totalorder %s4902_s6, %s3293_s11  ;;  %p3301_p1 = scmp.lt.s32.totalorder %s3299_s12, %s3293_s11 }
  0x59   : > { %718 = vmatprep.mubr.f32.mxu1 %v3357_v7  ;;  %630 = vmatmul.mubr.f32.gmra.mrb[4].mxu0 %v486_v49  ;;  %v2305_v38 = vld [vmem:[%s4945_s3 + $0x240] sm:$0xff]  ;;  %v2306_v39 = vld [vmem:[%s4945_s3 + $0x248] sm:$0xff]  ;;  %v2359_v8 = vld [vmem:[%s4945_s3 + $0x3f0] sm:$0xff] }
  0x5a   : > { %2911 = vmatpush1.bf16.msra.mxu0 %v2910_v48  ;;  %719 = vmatmul.mubr.f32.gmra.mrb[4].mxu1 %v486_v49  ;;  %v2962_v48 = vpack.c.bf16 %v2295_v42, %v2291_v40  ;;  %v2964_v49 = vpack.c.bf16 %v2314_v44, %v2313_v43  ;;  %v2337_v42 = vld [vmem:[%s4945_s3 + $0x340] sm:$0xff]  ;;  %v2338_v43 = vld [vmem:[%s4945_s3 + $0x348] sm:$0xff]  ;;  %p3295_p12 = pnand %p3294_p11, %p3427_p5  ;;  %p3302_p2 = por %p3301_p1, %p3300_p0 }
  0x5b   : > { %2943 = vmatpush1.bf16.msra.mxu1 %v2942_v50  ;;  %2913 = vmatprep.subr.bf16.mxu0 %v2912_v51  ;;  %v2996_v50 = vpack.c.bf16 %v2346_v46, %v2345_v45  ;;  %v2297_v51 = vld [vmem:[%s4945_s3 + $0x200] sm:$0xff]  ;;  %v3014_v44 = vpack.c.bf16 %v2338_v43, %v2337_v42  ;;  %v2323_v45 = vld [vmem:[%s4945_s3 + $0x2d0] sm:$0xff]  ;;  %v2324_v46 = vld [vmem:[%s4945_s3 + $0x2d8] sm:$0xff] }
  0x5c   : > { %2945 = vmatprep.subr.bf16.mxu1 %v2944_v55  ;;  %635 = vmatprep.mubr.f32.mxu0 %v3357_v7  ;;  %v2315_v55 = vld [vmem:[%s4945_s3 + $0x290] sm:$0xff]  ;;  %v2966_v60 = vpack.c.bf16 %v2298_v52, %v2297_v51  ;;  %v2308_v51 = vld [vmem:[%s4945_s3 + $0x258] sm:$0xff]  ;;  %v2326_v58 = vld [vmem:[%s4945_s3 + $0x2e8] sm:$0xff]  ;;  %p3296_p13 = pneg %p3295_p12 }
  0x5d   : > { %724 = vmatprep.mubr.f32.mxu1 %v3357_v7  ;;  %636 = vmatmul.mubr.f32.gmra.mrb[6].mxu0 %v487_v62  ;;  %v2357_v59 = vld [vmem:[%s4945_s3 + $0x3e0] sm:$0xff] }
  0x5e   : > { %2915 = vmatpush1.bf16.msra.mxu0 %v2914_v61  ;;  %725 = vmatmul.mubr.f32.gmra.mrb[6].mxu1 %v487_v62  ;;  %v2998_v61 = vpack.c.bf16 %v2330_v54, %v2329_v53  ;;  %v2968_v62 = vpack.c.bf16 %v2316_v56, %v2315_v55  ;;  %v2339_v54 = vld [vmem:[%s4945_s3 + $0x350] sm:$0xff]  ;;  %v2340_v55 = vld [vmem:[%s4945_s3 + $0x358] sm:$0xff]  ;;  %p3303_p3 = pnand %p3302_p2, %p3296_p13 }
  0x5f   : > { %2947 = vmatpush1.bf16.msra.mxu1 %v2946_v63  ;;  %2917 = vmatprep.subr.bf16.mxu0 %v2916_v0  ;;  %v2299_v63 = vld [vmem:[%s4945_s3 + $0x210] sm:$0xff]  ;;  %v2300_v0 = vld [vmem:[%s4945_s3 + $0x218] sm:$0xff]  ;;  %v3018_v56 = vpack.c.bf16 %v2340_v55, %v2339_v54 }
  0x60   : > { %2949 = vmatprep.subr.bf16.mxu1 %v2948_v4  ;;  %912 = vmatprep.mubr.f32.mxu0 %v3357_v7  ;;  %v2317_v4 = vld [vmem:[%s4945_s3 + $0x2a0] sm:$0xff]  ;;  %v2970_v10 = vpack.c.bf16 %v2300_v0, %v2299_v63  ;;  %v2310_v63 = vld [vmem:[%s4945_s3 + $0x268] sm:$0xff] }
  0x61   : > { %1001 = vmatprep.mubr.f32.mxu1 %v3357_v7 }
  0x62   : > { %2919 = vmatpush1.bf16.msra.mxu0 %v2918_v11  ;;  %v3002_v11 = vpack.c.bf16 %v2332_v3, %v2331_v1  ;;  %v2342_v3 = vld [vmem:[%s4945_s3 + $0x368] sm:$0xff] }
  0x63   : > { %2951 = vmatpush1.bf16.msra.mxu1 %v2950_v12  ;;  %2921 = vmatprep.subr.bf16.mxu0 %v2920_v13  ;;  %v2972_v12 = vpack.c.bf16 %v2318_v5, %v2317_v4  ;;  %v2301_v13 = vld [vmem:[%s4945_s3 + $0x220] sm:$0xff]  ;;  %v2327_v5 = vld [vmem:[%s4945_s3 + $0x2f0] sm:$0xff] }
  0x64   : > { %2953 = vmatprep.subr.bf16.mxu1 %v2952_v17  ;;  %v2334_v17 = vld [vmem:[%s4945_s3 + $0x328] sm:$0xff]  ;;  %v2974_v19 = vpack.c.bf16 %v2302_v14, %v2301_v13 }
  0x65   : > { %v3006_v20 = vpack.c.bf16 %v2334_v17, %v2333_v16  ;;  %v2344_v16 = vld [vmem:[%s4945_s3 + $0x378] sm:$0xff] }
  0x66   : > { %2923 = vmatpush1.bf16.msra.mxu0 %v2922_v23  ;;  %v2320_v23 = vld [vmem:[%s4945_s3 + $0x2b8] sm:$0xff] }
  0x67   : > { %2955 = vmatpush1.bf16.msra.mxu1 %v2954_v24  ;;  %2925 = vmatprep.subr.bf16.mxu0 %v2924_v25  ;;  %v2351_v24 = vld [vmem:[%s4945_s3 + $0x3b0] sm:$0xff]  ;;  %v2976_v25 = vpack.c.bf16 %v2320_v23, %v2319_v22  ;;  %v1237_v22 = vld [vmem:[%s4945_s3 + $0x188] sm:$0xff] }
  0x68   : > { %2957 = vmatprep.subr.bf16.mxu1 %v2956_v29  ;;  %v2978_v29 = vpack.c.bf16 %v2304_v27, %v2303_v26  ;;  %v1090_v26 = vld [vmem:[%s4944_s2] sm:$0xf] }
  0x6a   : > { %2927 = vmatpush1.bf16.msra.mxu0 %v2926_v35  ;;  %v2353_v35 = vld [vmem:[%s4945_s3 + $0x3c0] sm:$0xff] }
  0x6b   : > { %2959 = vmatpush1.bf16.msra.mxu1 %v2958_v36  ;;  %2929 = vmatprep.subr.bf16.mxu0 %v2928_v37  ;;  %v2980_v36 = vpack.c.bf16 %v2322_v34, %v2321_v33  ;;  %v2354_v37 = vld [vmem:[%s4945_s3 + $0x3c8] sm:$0xff] }
  0x6c   : > { %2961 = vmatprep.subr.bf16.mxu1 %v2960_v41  ;;  %v3012_v40 = vpack.c.bf16 %v2354_v37, %v2353_v35  ;;  %v2982_v41 = vpack.c.bf16 %v2306_v39, %v2305_v38 }
  0x6e   : > { %2931 = vmatpush1.bf16.msra.mxu0 %v2930_v47  ;;  %v2355_v47 = vld [vmem:[%s4945_s3 + $0x3d0] sm:$0xff] }
  0x6f   : > { %2963 = vmatpush1.bf16.msra.mxu1 %v2962_v48  ;;  %2965 = vmatprep.subr.bf16.mxu0 %v2964_v49  ;;  %v2984_v48 = vpack.c.bf16 %v2324_v46, %v2323_v45  ;;  %v2356_v49 = vld [vmem:[%s4945_s3 + $0x3d8] sm:$0xff] }
  0x70   : > { %2997 = vmatprep.subr.bf16.mxu1 %v2996_v50  ;;  %v2307_v50 = vld [vmem:[%s4945_s3 + $0x250] sm:$0xff]  ;;  %v3016_v52 = vpack.c.bf16 %v2356_v49, %v2355_v47 }
  0x71   : > { %913 = vmatmul.mubr.f32.vlgmr.msra.gmra.mrb[0].mxu0 %v779_v57  ;;  %v2986_v53 = vpack.c.bf16 %v2308_v51, %v2307_v50 }
  0x72   : > { %1002 = vmatmul.mubr.f32.vlgmr.msra.gmra.mrb[0].mxu1 %v779_v57  ;;  %918 = vmatprep.mubr.f32.mxu0 %v3357_v7  ;;  %v2325_v57 = vld [vmem:[%s4945_s3 + $0x2e0] sm:$0xff] }
  0x73   : > { %1007 = vmatprep.mubr.f32.mxu1 %v3357_v7  ;;  %2967 = vmatpush3.bf16.msra.mxu0 %v2966_v60  ;;  %v2988_v60 = vpack.c.bf16 %v2326_v58, %v2325_v57 }
  0x74   : > { %2999 = vmatpush3.bf16.msra.mxu1 %v2998_v61  ;;  %2969 = vmatprep.subr.bf16.mxu0 %v2968_v62  ;;  %v2358_v61 = vld [vmem:[%s4945_s3 + $0x3e8] sm:$0xff]  ;;  %v2309_v62 = vld [vmem:[%s4945_s3 + $0x260] sm:$0xff] }
  0x75   : > { %919 = vmatmul.mubr.f32.gmra.mrb[2].mxu0 %v780_v6  ;;  %3001 = vmatprep.subr.bf16.mxu1 %v3000_v2  ;;  %v3020_v0 = vpack.c.bf16 %v2358_v61, %v2357_v59  ;;  %v2990_v1 = vpack.c.bf16 %v2310_v63, %v2309_v62  ;;  %v2341_v2 = vld [vmem:[%s4945_s3 + $0x360] sm:$0xff] }
  0x76   : > { %1008 = vmatmul.mubr.f32.gmra.mrb[2].mxu1 %v780_v6  ;;  %924 = vmatprep.mubr.f32.mxu0 %v3357_v7  ;;  %v3022_v4 = vpack.c.bf16 %v2342_v3, %v2341_v2  ;;  %v2328_v6 = vld [vmem:[%s4945_s3 + $0x2f8] sm:$0xff] }
  0x77   : > { %1013 = vmatprep.mubr.f32.mxu1 %v3357_v7  ;;  %2971 = vmatpush3.bf16.msra.mxu0 %v2970_v10  ;;  %v2992_v9 = vpack.c.bf16 %v2328_v6, %v2327_v5  ;;  %v2360_v10 = vld [vmem:[%s4945_s3 + $0x3f8] sm:$0xff] }
  0x78   : > { %3003 = vmatpush3.bf16.msra.mxu1 %v3002_v11  ;;  %2973 = vmatprep.subr.bf16.mxu0 %v2972_v12  ;;  %v2311_v11 = vld [vmem:[%s4945_s3 + $0x270] sm:$0xff]  ;;  %v2312_v12 = vld [vmem:[%s4945_s3 + $0x278] sm:$0xff]  ;;  %v3024_v13 = vpack.c.bf16 %v2360_v10, %v2359_v8 }
  0x79   : > { %925 = vmatmul.mubr.f32.gmra.mrb[4].mxu0 %v781_v18  ;;  %3005 = vmatprep.subr.bf16.mxu1 %v3004_v15  ;;  %v2994_v14 = vpack.c.bf16 %v2312_v12, %v2311_v11  ;;  %v2343_v15 = vld [vmem:[%s4945_s3 + $0x370] sm:$0xff] }
  0x7a   : > { %1014 = vmatmul.mubr.f32.gmra.mrb[4].mxu1 %v781_v18  ;;  %930 = vmatprep.mubr.f32.mxu0 %v3357_v7  ;;  %v3026_v17 = vpack.c.bf16 %v2344_v16, %v2343_v15  ;;  %v1204_v18 = vld [vmem:[%s4945_s3 + $0x80] sm:$0xff] }
  0x7b   : > { %1019 = vmatprep.mubr.f32.mxu1 %v3357_v7  ;;  %2975 = vmatpush3.bf16.msra.mxu0 %v2974_v19  ;;  %v2352_v7 = vld [vmem:[%s4945_s3 + $0x3b8] sm:$0xff]  ;;  %v1205_v19 = vld [vmem:[%s4945_s3 + $0x88] sm:$0xff] }
  0x7c   : > { %3007 = vmatpush3.bf16.msra.mxu1 %v3006_v20  ;;  %v3008_v28 = vpack.c.bf16 %v2352_v7, %v2351_v24  ;;  %2977 = vmatprep.subr.bf16.mxu0 %v2976_v25  ;;  %v1236_v20 = vld [vmem:[%s4945_s3 + $0x180] sm:$0xff]  ;;  %v1092_v24 = vlaneseq }
  0x7d   : > { %931 = vmatmul.mubr.f32.gmra.mrb[6].mxu0 %v782_v21  ;;  %v3060_v23 = vpack.c.bf16 %v1237_v22, %v1236_v20 }
  0x7e   : > { %1020 = vmatmul.mubr.f32.gmra.mrb[6].mxu1 %v782_v21  ;;  %3009 = vmatprep.subr.bf16.mxu1 %v3008_v28  ;;  %v3028_v21 = vpack.c.bf16 %v1205_v19, %v1204_v18  ;;  %v1093_v25 = vshrl.u32 %v1092_v24, 7 }
  0x7f   : > { %2979 = vmatpush3.bf16.msra.mxu0 %v2978_v29 }
  0x80   : > { %3011 = vmatpush3.bf16.msra.mxu1 %v3010_v32  ;;  %2981 = vmatprep.subr.bf16.mxu0 %v2980_v36  ;;  %v1098_v7 = vsub.s32 1, %v1093_v25  ;;  %v1094_v27 = vsub.s32 0, %v1093_v25  ;;  %v1106_v28 = vsub.s32 3, %v1093_v25  ;;  %v1102_v30 = vsub.s32 2, %v1093_v25 }
  0x81   : > { %3013 = vmatprep.subr.bf16.mxu1 %v3012_v40 }
  0x82   : > { %v4272_v33 = vrot.slane %v1090_v26, %v1098_v7  ;;  %v4274_v35 = vrot.slane %v1090_v26, %v1094_v27  ;;  %v4276_v36 = vrot.slane %v1090_v26, %v1106_v28  ;;  %v4278_v37 = vrot.slane %v1090_v26, %v1102_v30  ;;  %v1188_v30 = vld [vmem:[%s4945_s3] sm:$0xff] }
  0x83   : > { %2983 = vmatpush3.bf16.msra.mxu0 %v2982_v41 }
  0x84   : > { %3015 = vmatpush3.bf16.msra.mxu1 %v3014_v44  ;;  %2985 = vmatprep.subr.bf16.mxu0 %v2984_v48 }
  0x85   : > { %3017 = vmatprep.subr.bf16.mxu1 %v3016_v52 }
  0x87   : > { %2987 = vmatpush3.bf16.msra.mxu0 %v2986_v53 }
  0x88   : > { %3019 = vmatpush3.bf16.msra.mxu1 %v3018_v56  ;;  %2989 = vmatprep.subr.bf16.mxu0 %v2988_v60 }
  0x89   : > { %3021 = vmatprep.subr.bf16.mxu1 %v3020_v0 }
  0x8b   : > { %2991 = vmatpush3.bf16.msra.mxu0 %v2990_v1 }
  0x8c   : > { %3023 = vmatpush3.bf16.msra.mxu1 %v3022_v4  ;;  %2993 = vmatprep.subr.bf16.mxu0 %v2992_v9 }
  0x8d   : > { %3025 = vmatprep.subr.bf16.mxu1 %v3024_v13 }
  0x8f   : > { %2995 = vmatpush3.bf16.msra.mxu0 %v2994_v14 }
  0x90   : > { %3027 = vmatpush3.bf16.msra.mxu1 %v3026_v17  ;;  %3029 = vmatprep.subr.bf16.mxu0 %v3028_v21 }
  0x91   : > { %3061 = vmatprep.subr.bf16.mxu1 %v3060_v23 }
 0x144   : > { %v4268_v29 = vpop.f32.mrb[0].mxu0 }
 0x145   : > { %v4270_v31 = vpop.f32.mrb[0].mxu1  ;;  %v916_v32 = vpop.f32.mrb[1].mxu0 }
 0x146   : > { %v1005_v34 = vpop.f32.mrb[1].mxu1  ;;  %v1113_v42 = vadd.f32 %v4272_v33, %v916_v32  ;;  %v1189_v32 = vld [vmem:[%s4945_s3 + $0x8] sm:$0xff] }
 0x147   : > { %v1115_v46 = vadd.f32 %v4276_v36, %v1005_v34 }
 0x148   : > { %v920_v38 = vpop.f32.mrb[2].mxu0  ;;  %v1129_v54 = vmax.f32 %v1113_v42, 0.0 }
 0x149   : > { %v1116_v39 = vadd.f32 %v4274_v35, %v920_v38  ;;  %v1009_v40 = vpop.f32.mrb[2].mxu1  ;;  %v922_v41 = vpop.f32.mrb[3].mxu0  ;;  %v1131_v57 = vmax.f32 %v1115_v46, 0.0  ;;  %v3030_v46 = vpack.c.bf16 %v1189_v32, %v1188_v30  ;;  %v1213_v30 = vld [vmem:[%s4945_s3 + $0xc8] sm:$0xff] }
 0x14a   : > { %v1118_v43 = vadd.f32 %v4278_v37, %v1009_v40  ;;  %v1117_v44 = vadd.f32 %v4272_v33, %v922_v41  ;;  %v1011_v45 = vpop.f32.mrb[3].mxu1  ;;  %v1170_v0 = vrot.slane %v1129_v54, 4  ;;  %v1221_v40 = vld [vmem:[%s4945_s3 + $0x108] sm:$0xff] }
 0x14b   : > { %v1119_v47 = vadd.f32 %v4276_v36, %v1011_v45  ;;  %v1132_v48 = vmax.f32 %v1116_v39, 0.0  ;;  %v1182_v4 = vrot.slane %v1131_v57, 4  ;;  %v1220_v39 = vld [vmem:[%s4945_s3 + $0x100] sm:$0xff] }
 0x14c   : > { %v926_v49 = vpop.f32.mrb[4].mxu0  ;;  %v1134_v50 = vmax.f32 %v1118_v43, 0.0  ;;  %v1133_v51 = vmax.f32 %v1117_v44, 0.0  ;;  %v1171_v10 = vadd.f32 %v1170_v0, %v1129_v54  ;;  %v1206_v43 = vld [vmem:[%s4945_s3 + $0x90] sm:$0xff]  ;;  %v1207_v44 = vld [vmem:[%s4945_s3 + $0x98] sm:$0xff] }
 0x14d   : > { %v1015_v52 = vpop.f32.mrb[4].mxu1  ;;  %v4286_v53 = vpop.f32.mrb[5].mxu0  ;;  %v1135_v55 = vmax.f32 %v1119_v47, 0.0  ;;  %v1256_v58 = vrot.slane %v1132_v48, 4  ;;  %v4291_v2 = vadd.f32 %v4274_v35, %v926_v49  ;;  %v1183_v13 = vadd.f32 %v1182_v4, %v1131_v57  ;;  %v1239_v49 = vld [vmem:[%s4945_s3 + $0x198] sm:$0xff]  ;;  %v1190_v54 = vld [vmem:[%s4945_s3 + $0x10] sm:$0xff] }
 0x14e   : > { %v4288_v56 = vpop.f32.mrb[5].mxu1  ;;  %v1268_v60 = vrot.slane %v1134_v50, 4  ;;  %v1262_v61 = vrot.slane %v1133_v51, 4  ;;  %v4294_v5 = vadd.f32 %v4278_v37, %v1015_v52  ;;  %v1172_v19 = vrot.slane %v1171_v10, 2  ;;  %v1222_v57 = vld [vmem:[%s4945_s3 + $0x110] sm:$0xff] }
 0x14f   : > { %v1274_v1 = vrot.slane %v1135_v55, 4  ;;  %v1257_v6 = vadd.f32 %v1256_v58, %v1132_v48  ;;  %v1184_v22 = vrot.slane %v1183_v13, 2  ;;  %v1238_v48 = vld [vmem:[%s4945_s3 + $0x190] sm:$0xff]  ;;  %v3062_v52 = vpack.c.bf16 %v1221_v40, %v1220_v39 }
 0x150   : > { %v932_v59 = vpop.f32.mrb[6].mxu0  ;;  %v1269_v8 = vadd.f32 %v1268_v60, %v1134_v50  ;;  %v1263_v9 = vadd.f32 %v1262_v61, %v1133_v51  ;;  %v1173_v7 = vadd.f32 %v1172_v19, %v1171_v10  ;;  %v1223_v60 = vld [vmem:[%s4945_s3 + $0x118] sm:$0xff]  ;;  %v1208_v61 = vld [vmem:[%s4945_s3 + $0xa0] sm:$0xff]  ;;  %v3064_v0 = vpack.c.bf16 %v1239_v49, %v1238_v48  ;;  %v1229_v49 = vld [vmem:[%s4945_s3 + $0x148] sm:$0xff] }
 0x151   : > { %v1021_v62 = vpop.f32.mrb[6].mxu1  ;;  %v934_v63 = vpop.f32.mrb[7].mxu0  ;;  %v1275_v11 = vadd.f32 %v1274_v1, %v1135_v55  ;;  %v4297_v12 = vadd.f32 %v4274_v35, %v932_v59  ;;  %v1258_v15 = vrot.slane %v1257_v6, 2  ;;  %v1185_v27 = vadd.f32 %v1184_v22, %v1183_v13  ;;  %v1191_v55 = vld [vmem:[%s4945_s3 + $0x18] sm:$0xff]  ;;  %v1240_v1 = vld [vmem:[%s4945_s3 + $0x1a0] sm:$0xff]  ;;  %v1193_v13 = vld [vmem:[%s4945_s3 + $0x28] sm:$0xff] }
 0x152   : > { %v1023_v3 = vpop.f32.mrb[7].mxu1  ;;  %v4300_v14 = vadd.f32 %v4278_v37, %v1021_v62  ;;  %v1270_v16 = vrot.slane %v1269_v8, 2  ;;  %v1264_v17 = vrot.slane %v1263_v9, 2  ;;  %v4303_v18 = vadd.f32 %v4272_v33, %v934_v63  ;;  %v1209_v62 = vld [vmem:[%s4945_s3 + $0xa8] sm:$0xff]  ;;  %v1211_v19 = vld [vmem:[%s4945_s3 + $0xb8] sm:$0xff] }
 0x153   : > { %v1276_v20 = vrot.slane %v1275_v11, 2  ;;  %v4306_v21 = vadd.f32 %v4276_v36, %v1023_v3  ;;  %v1259_v23 = vadd.f32 %v1258_v15, %v1257_v6  ;;  %v1174_v42 = vrot.slane %v1173_v7, 1  ;;  %v1241_v3 = vld [vmem:[%s4945_s3 + $0x1a8] sm:$0xff]  ;;  %v1224_v15 = vld [vmem:[%s4945_s3 + $0x120] sm:$0xff] }
 0x154   : > { %v1271_v24 = vadd.f32 %v1270_v16, %v1269_v8  ;;  %v1265_v25 = vadd.f32 %v1264_v17, %v1263_v9  ;;  %v1186_v47 = vrot.slane %v1185_v27, 1  ;;  %v3032_v59 = vpack.c.bf16 %v1207_v44, %v1206_v43  ;;  %v1225_v16 = vld [vmem:[%s4945_s3 + $0x128] sm:$0xff]  ;;  %v1210_v17 = vld [vmem:[%s4945_s3 + $0xb0] sm:$0xff]  ;;  %v1196_v44 = vld [vmem:[%s4945_s3 + $0x40] sm:$0xff] }
 0x155   : > { %v1277_v26 = vadd.f32 %v1276_v20, %v1275_v11  ;;  %v1260_v28 = vrot.slane %v1259_v23, 1  ;;  %v1175_v63 = vadd.f32 %v1174_v42, %v1173_v7  ;;  %v3034_v6 = vpack.c.bf16 %v1191_v55, %v1190_v54  ;;  %v1192_v11 = vld [vmem:[%s4945_s3 + $0x20] sm:$0xff]  ;;  %v1195_v7 = vld [vmem:[%s4945_s3 + $0x38] sm:$0xff]  ;;  %v1246_v54 = vld [vmem:[%s4945_s3 + $0x1d0] sm:$0xff] }
 0x156   : > { %v1272_v34 = vrot.slane %v1271_v24, 1  ;;  %v1266_v38 = vrot.slane %v1265_v25, 1  ;;  %v1187_v4 = vadd.f32 %v1186_v47, %v1185_v27  ;;  %v4358_v8 = vadd.f32 %v4274_v35, %v4268_v29  ;;  %v1227_v27 = vld [vmem:[%s4945_s3 + $0x138] sm:$0xff] }
 0x157   : > { %v1278_v41 = vrot.slane %v1277_v26, 1  ;;  %v1261_v50 = vadd.f32 %v1260_v28, %v1259_v23  ;;  %v3066_v9 = vpack.c.bf16 %v1223_v60, %v1222_v57  ;;  %v3036_v10 = vpack.c.bf16 %v1209_v62, %v1208_v61  ;;  %v1212_v28 = vld [vmem:[%s4945_s3 + $0xc0] sm:$0xff]  ;;  %v1247_v55 = vld [vmem:[%s4945_s3 + $0x1d8] sm:$0xff]  ;;  %v1198_v62 = vld [vmem:[%s4945_s3 + $0x50] sm:$0xff] }
 0x158   : > { %v1267_v45 = vadd.f32 %v1266_v38, %v1265_v25  ;;  %v1273_v58 = vadd.f32 %v1272_v34, %v1271_v24  ;;  %v4371_v29 = vadd.f32 %v4278_v37, %v4270_v31  ;;  %v3068_v35 = vpack.c.bf16 %v1241_v3, %v1240_v1  ;;  %v1242_v31 = vld [vmem:[%s4945_s3 + $0x1b0] sm:$0xff]  ;;  %v1243_v37 = vld [vmem:[%s4945_s3 + $0x1b8] sm:$0xff]  ;;  %v1244_v34 = vld [vmem:[%s4945_s3 + $0x1c0] sm:$0xff] }
 0x159   : > { %v1279_v51 = vadd.f32 %v1278_v41, %v1277_v26  ;;  %v1121_v20 = vadd.f32 %v4272_v33, %v4286_v53  ;;  %v1123_v22 = vadd.f32 %v4276_v36, %v4288_v56  ;;  %v3038_v23 = vpack.c.bf16 %v1193_v13, %v1192_v11  ;;  %v1194_v53 = vld [vmem:[%s4945_s3 + $0x30] sm:$0xff]  ;;  %v1245_v38 = vld [vmem:[%s4945_s3 + $0x1c8] sm:$0xff] }
 0x15a   : > { %1409 = vmatprep.mubr.f32.mxu0 %v1267_v45  ;;  %v1128_v24 = vmax.f32 %v4358_v8, 0.0  ;;  %v3070_v25 = vpack.c.bf16 %v1225_v16, %v1224_v15  ;;  %v3040_v33 = vpack.c.bf16 %v1211_v19, %v1210_v17  ;;  %v1226_v36 = vld [vmem:[%s4945_s3 + $0x130] sm:$0xff]  ;;  %v1130_v56 = vmax.f32 %v4371_v29, 0.0  ;;  %v1197_v45 = vld [vmem:[%s4945_s3 + $0x48] sm:$0xff]  ;;  %v1200_v17 = vld [vmem:[%s4945_s3 + $0x60] sm:$0xff] }
 0x15b   : > { %1479 = vmatprep.mubr.f32.mxu1 %v1279_v51  ;;  %1410 = vmatmul.mubr.f32.vlgmr.msra.gmra.mrb[8].mxu0 %v1261_v50  ;;  %v3072_v26 = vpack.c.bf16 %v1243_v37, %v1242_v31  ;;  %v1137_v32 = vmax.f32 %v1121_v20, 0.0  ;;  %v1139_v39 = vmax.f32 %v1123_v22, 0.0  ;;  %v3042_v40 = vpack.c.bf16 %v1195_v7, %v1194_v53  ;;  %v1214_v50 = vld [vmem:[%s4945_s3 + $0xd0] sm:$0xff]  ;;  %v1215_v51 = vld [vmem:[%s4945_s3 + $0xd8] sm:$0xff]  ;;  %v1217_v8 = vld [vmem:[%s4945_s3 + $0xe8] sm:$0xff] }
 0x15c   : > { %1480 = vmatmul.mubr.f32.vlgmr.msra.gmra.mrb[8].mxu1 %v1273_v58  ;;  %3031 = vmatpush3.bf16.msra.mxu0 %v3030_v46  ;;  %v1164_v41 = vrot.slane %v1128_v24, 4  ;;  %v3074_v42 = vpack.c.bf16 %v1227_v27, %v1226_v36  ;;  %v3044_v43 = vpack.c.bf16 %v1213_v30, %v1212_v28  ;;  %v1228_v46 = vld [vmem:[%s4945_s3 + $0x140] sm:$0xff]  ;;  %v1176_v47 = vrot.slane %v1130_v56, 4  ;;  %v1249_v11 = vld [vmem:[%s4945_s3 + $0x1e8] sm:$0xff]  ;;  %v1251_v53 = vld [vmem:[%s4945_s3 + $0x1f8] sm:$0xff] }
 0x15d   : > { %3063 = vmatpush3.bf16.msra.mxu1 %v3062_v52  ;;  %1549 = vmatprep.mubr.f32.mxu0 %v1175_v63  ;;  %v3076_v48 = vpack.c.bf16 %v1245_v38, %v1244_v34  ;;  %v1635_v52 = vrot.slane %v1137_v32, 4  ;;  %v1647_v57 = vrot.slane %v1139_v39, 4  ;;  %v3046_v58 = vpack.c.bf16 %v1197_v45, %v1196_v44  ;;  %v1199_v63 = vld [vmem:[%s4945_s3 + $0x58] sm:$0xff]  ;;  %v1201_v19 = vld [vmem:[%s4945_s3 + $0x68] sm:$0xff]  ;;  %v1232_v20 = vld [vmem:[%s4945_s3 + $0x160] sm:$0xff] }
 0x15e   : > { %1619 = vmatprep.mubr.f32.mxu1 %v1187_v4  ;;  %3033 = vmatprep.subr.bf16.mxu0 %v3032_v59  ;;  %v1165_v59 = vadd.f32 %v1164_v41, %v1128_v24  ;;  %v3078_v60 = vpack.c.bf16 %v1229_v49, %v1228_v46  ;;  %v3048_v61 = vpack.c.bf16 %v1215_v51, %v1214_v50  ;;  %v1231_v4 = vld [vmem:[%s4945_s3 + $0x158] sm:$0xff]  ;;  %v1233_v22 = vld [vmem:[%s4945_s3 + $0x168] sm:$0xff]  ;;  %v1202_v28 = vld [vmem:[%s4945_s3 + $0x70] sm:$0xff] }
 0x15f   : > { %3065 = vmatprep.subr.bf16.mxu1 %v3064_v0  ;;  %v1230_v0 = vld [vmem:[%s4945_s3 + $0x150] sm:$0xff]  ;;  %v1177_v1 = vadd.f32 %v1176_v47, %v1130_v56  ;;  %v3080_v3 = vpack.c.bf16 %v1247_v55, %v1246_v54  ;;  %v1648_v13 = vadd.f32 %v1647_v57, %v1139_v39  ;;  %v3050_v15 = vpack.c.bf16 %v1199_v63, %v1198_v62  ;;  %v1219_v24 = vld [vmem:[%s4945_s3 + $0xf8] sm:$0xff]  ;;  %v2378_v41 = vld [vmem:[%s4945_s3 + $0x488] sm:$0xff] }
 0x160   : > { %3035 = vmatpush3.bf16.msra.mxu0 %v3034_v6  ;;  %v1216_v6 = vld [vmem:[%s4945_s3 + $0xe0] sm:$0xff]  ;;  %v1166_v29 = vrot.slane %v1165_v59, 2  ;;  %v3054_v36 = vpack.c.bf16 %v1201_v19, %v1200_v17  ;;  %v1203_v30 = vld [vmem:[%s4945_s3 + $0x78] sm:$0xff]  ;;  %v2410_v44 = vld [vmem:[%s4945_s3 + $0x588] sm:$0xff] }
 0x161   : > { %3067 = vmatpush3.bf16.msra.mxu1 %v3066_v9  ;;  %3037 = vmatprep.subr.bf16.mxu0 %v3036_v10  ;;  %v1636_v9 = vadd.f32 %v1635_v52, %v1137_v32  ;;  %v1248_v10 = vld [vmem:[%s4945_s3 + $0x1e0] sm:$0xff]  ;;  %v3052_v16 = vpack.c.bf16 %v1217_v8, %v1216_v6  ;;  %v1178_v31 = vrot.slane %v1177_v1, 2  ;;  %v1649_v7 = vrot.slane %v1648_v13, 2  ;;  %v1234_v32 = vld [vmem:[%s4945_s3 + $0x170] sm:$0xff]  ;;  %v1235_v39 = vld [vmem:[%s4945_s3 + $0x178] sm:$0xff] }
 0x162   : > { %3069 = vmatprep.subr.bf16.mxu1 %v3068_v35  ;;  %v3082_v35 = vpack.c.bf16 %v1231_v4, %v1230_v0  ;;  %v3084_v37 = vpack.c.bf16 %v1249_v11, %v1248_v10  ;;  %v1167_v56 = vadd.f32 %v1166_v29, %v1165_v59  ;;  %v3058_v46 = vpack.c.bf16 %v1203_v30, %v1202_v28  ;;  %v2361_v50 = vld [vmem:[%s4945_s3 + $0x400] sm:$0xff]  ;;  %v2362_v51 = vld [vmem:[%s4945_s3 + $0x408] sm:$0xff]  ;;  %v2379_v59 = vld [vmem:[%s4945_s3 + $0x490] sm:$0xff] }
 0x163   : > { %v1179_v34 = vadd.f32 %v1178_v31, %v1177_v1  ;;  %v1650_v45 = vadd.f32 %v1649_v7, %v1648_v13  ;;  %v2393_v55 = vld [vmem:[%s4945_s3 + $0x500] sm:$0xff]  ;;  %v2394_v57 = vld [vmem:[%s4945_s3 + $0x508] sm:$0xff]  ;;  %v2411_v63 = vld [vmem:[%s4945_s3 + $0x590] sm:$0xff] }
 0x164   : > { %3039 = vmatpush3.bf16.msra.mxu0 %v3038_v23  ;;  %v1218_v23 = vld [vmem:[%s4945_s3 + $0xf0] sm:$0xff]  ;;  %v1168_v47 = vrot.slane %v1167_v56, 1  ;;  %v2412_v0 = vld [vmem:[%s4945_s3 + $0x598] sm:$0xff]  ;;  %v2381_v13 = vld [vmem:[%s4945_s3 + $0x4a0] sm:$0xff] }
 0x165   : > { %3071 = vmatpush3.bf16.msra.mxu1 %v3070_v25  ;;  %3041 = vmatprep.subr.bf16.mxu0 %v3040_v33  ;;  %v1637_v25 = vrot.slane %v1636_v9, 2  ;;  %v1250_v33 = vld [vmem:[%s4945_s3 + $0x1f0] sm:$0xff]  ;;  %v3056_v27 = vpack.c.bf16 %v1219_v24, %v1218_v23  ;;  %v1180_v52 = vrot.slane %v1179_v34, 1  ;;  %v1651_v62 = vrot.slane %v1650_v45, 1  ;;  %v2364_v6 = vld [vmem:[%s4945_s3 + $0x418] sm:$0xff]  ;;  %v2414_v17 = vld [vmem:[%s4945_s3 + $0x5a8] sm:$0xff] }
 0x166   : > { %3073 = vmatprep.subr.bf16.mxu1 %v3072_v26  ;;  %v3086_v26 = vpack.c.bf16 %v1233_v22, %v1232_v20  ;;  %v3088_v38 = vpack.c.bf16 %v1251_v53, %v1250_v33  ;;  %v1169_v1 = vadd.f32 %v1168_v47, %v1167_v56  ;;  %v2363_v4 = vld [vmem:[%s4945_s3 + $0x410] sm:$0xff]  ;;  %v2396_v11 = vld [vmem:[%s4945_s3 + $0x518] sm:$0xff]  ;;  %v2365_v22 = vld [vmem:[%s4945_s3 + $0x420] sm:$0xff] }
 0x167   : > { %v2395_v8 = vld [vmem:[%s4945_s3 + $0x510] sm:$0xff]  ;;  %v1652_v19 = vadd.f32 %v1651_v62, %v1650_v45  ;;  %v3098_v20 = vpack.c.bf16 %v2364_v6, %v2363_v4  ;;  %v2366_v23 = vld [vmem:[%s4945_s3 + $0x428] sm:$0xff]  ;;  %v2397_v24 = vld [vmem:[%s4945_s3 + $0x520] sm:$0xff]  ;;  %v1143_v45 = vmax.f32 %v4306_v21, 0.0 }
 0x168   : > { %3043 = vmatpush3.bf16.msra.mxu0 %v3042_v40  ;;  %v2377_v40 = vld [vmem:[%s4945_s3 + $0x480] sm:$0xff]  ;;  %v3130_v31 = vpack.c.bf16 %v2396_v11, %v2395_v8  ;;  %v2398_v33 = vld [vmem:[%s4945_s3 + $0x528] sm:$0xff]  ;;  %v2383_v53 = vld [vmem:[%s4945_s3 + $0x4b0] sm:$0xff] }
 0x169   : > { %3075 = vmatpush3.bf16.msra.mxu1 %v3074_v42  ;;  %3045 = vmatprep.subr.bf16.mxu0 %v3044_v43  ;;  %v1638_v42 = vadd.f32 %v1637_v25, %v1636_v9  ;;  %v2409_v43 = vld [vmem:[%s4945_s3 + $0x580] sm:$0xff]  ;;  %v3092_v49 = vpack.c.bf16 %v2378_v41, %v2377_v40  ;;  %v1181_v9 = vadd.f32 %v1180_v52, %v1179_v34  ;;  %v2384_v7 = vld [vmem:[%s4945_s3 + $0x4b8] sm:$0xff]  ;;  %v2403_v6 = vld [vmem:[%s4945_s3 + $0x550] sm:$0xff] }
 0x16a   : > { %3077 = vmatprep.subr.bf16.mxu1 %v3076_v48  ;;  %v3090_v48 = vpack.c.bf16 %v1235_v39, %v1234_v32  ;;  %v3124_v54 = vpack.c.bf16 %v2410_v44, %v2409_v43  ;;  %v2416_v56 = vld [vmem:[%s4945_s3 + $0x5b8] sm:$0xff]  ;;  %v3134_v28 = vpack.c.bf16 %v2398_v33, %v2397_v24  ;;  %v3104_v30 = vpack.c.bf16 %v2384_v7, %v2383_v53  ;;  %v2367_v32 = vld [vmem:[%s4945_s3 + $0x430] sm:$0xff]  ;;  %v2385_v41 = vld [vmem:[%s4945_s3 + $0x4c0] sm:$0xff] }
 0x16b   : > { %v2368_v34 = vld [vmem:[%s4945_s3 + $0x438] sm:$0xff]  ;;  %v1138_v39 = vmax.f32 %v4294_v5, 0.0  ;;  %v1141_v43 = vmax.f32 %v4303_v18, 0.0  ;;  %v2417_v5 = vld [vmem:[%s4945_s3 + $0x5c0] sm:$0xff]  ;;  %v2418_v44 = vld [vmem:[%s4945_s3 + $0x5c8] sm:$0xff] }
 0x16c   : > { %3047 = vmatpush3.bf16.msra.mxu0 %v3046_v58  ;;  %v1639_v58 = vrot.slane %v1638_v42, 1  ;;  %v2400_v40 = vld [vmem:[%s4945_s3 + $0x538] sm:$0xff]  ;;  %v2369_v18 = vld [vmem:[%s4945_s3 + $0x440] sm:$0xff]  ;;  %v3140_v52 = vpack.c.bf16 %v2418_v44, %v2417_v5  ;;  %v2406_v33 = vld [vmem:[%s4945_s3 + $0x568] sm:$0xff] }
 0x16d   : > { %3079 = vmatpush3.bf16.msra.mxu1 %v3078_v60  ;;  %3049 = vmatprep.subr.bf16.mxu0 %v3048_v61  ;;  %v2380_v60 = vld [vmem:[%s4945_s3 + $0x498] sm:$0xff]  ;;  %v3094_v61 = vpack.c.bf16 %v2362_v51, %v2361_v50  ;;  %v2370_v50 = vld [vmem:[%s4945_s3 + $0x448] sm:$0xff]  ;;  %v2401_v51 = vld [vmem:[%s4945_s3 + $0x540] sm:$0xff]  ;;  %v1641_v21 = vrot.slane %v1138_v39, 4 }
 0x16e   : > { %3081 = vmatprep.subr.bf16.mxu1 %v3080_v3  ;;  %v3126_v3 = vpack.c.bf16 %v2394_v57, %v2393_v55  ;;  %v3096_v10 = vpack.c.bf16 %v2380_v60, %v2379_v59  ;;  %v1640_v29 = vadd.f32 %v1639_v58, %v1638_v42  ;;  %v2386_v42 = vld [vmem:[%s4945_s3 + $0x4c8] sm:$0xff]  ;;  %v2387_v55 = vld [vmem:[%s4945_s3 + $0x4d0] sm:$0xff]  ;;  %v2388_v57 = vld [vmem:[%s4945_s3 + $0x4d8] sm:$0xff]  ;;  %v1869_v58 = vrot.slane %v1141_v43, 4 }
 0x16f   : > { %v2419_v59 = vld [vmem:[%s4945_s3 + $0x5d0] sm:$0xff]  ;;  %v2420_v60 = vld [vmem:[%s4945_s3 + $0x5d8] sm:$0xff]  ;;  %v3110_v62 = vpack.c.bf16 %v2370_v50, %v2369_v18  ;;  %v1642_v8 = vadd.f32 %v1641_v21, %v1138_v39  ;;  %v2389_v11 = vld [vmem:[%s4945_s3 + $0x4e0] sm:$0xff] }
 0x170   : > { %3051 = vmatpush3.bf16.msra.mxu0 %v3050_v15  ;;  %v2382_v15 = vld [vmem:[%s4945_s3 + $0x4a8] sm:$0xff]  ;;  %v2372_v4 = vld [vmem:[%s4945_s3 + $0x458] sm:$0xff]  ;;  %v2391_v53 = vld [vmem:[%s4945_s3 + $0x4f0] sm:$0xff] }
 0x171   : > { %3083 = vmatpush3.bf16.msra.mxu1 %v3082_v35  ;;  %3053 = vmatprep.subr.bf16.mxu0 %v3052_v16  ;;  %v3128_v35 = vpack.c.bf16 %v2412_v0, %v2411_v63  ;;  %v2413_v16 = vld [vmem:[%s4945_s3 + $0x5a0] sm:$0xff]  ;;  %v1643_v24 = vrot.slane %v1642_v8, 2  ;;  %v2392_v7 = vld [vmem:[%s4945_s3 + $0x4f8] sm:$0xff]  ;;  %v2442_v5 = vld [vmem:[%s4945_s3 + $0x688] sm:$0xff] }
 0x172   : > { %3085 = vmatprep.subr.bf16.mxu1 %v3084_v37  ;;  %v3100_v37 = vpack.c.bf16 %v2382_v15, %v2381_v13  ;;  %v3132_v25 = vpack.c.bf16 %v2414_v17, %v2413_v16  ;;  %v2390_v13 = vld [vmem:[%s4945_s3 + $0x4e8] sm:$0xff]  ;;  %v1870_v15 = vadd.f32 %v1869_v58, %v1141_v43  ;;  %v2376_v39 = vld [vmem:[%s4945_s3 + $0x478] sm:$0xff]  ;;  %v2441_v43 = vld [vmem:[%s4945_s3 + $0x680] sm:$0xff] }
 0x173   : > { %v3156_v50 = vpack.c.bf16 %v2442_v5, %v2441_v43  ;;  %v2426_v21 = vld [vmem:[%s4945_s3 + $0x608] sm:$0xff] }
 0x174   : > { %3055 = vmatpush3.bf16.msra.mxu0 %v3054_v36  ;;  %v2415_v36 = vld [vmem:[%s4945_s3 + $0x5b0] sm:$0xff] }
 0x175   : > { %3087 = vmatpush3.bf16.msra.mxu1 %v3086_v26  ;;  %3057 = vmatprep.subr.bf16.mxu0 %v3056_v27  ;;  %v3102_v26 = vpack.c.bf16 %v2366_v23, %v2365_v22  ;;  %v1136_v27 = vmax.f32 %v4291_v2, 0.0  ;;  %v3136_v2 = vpack.c.bf16 %v2416_v56, %v2415_v36  ;;  %v2374_v22 = vld [vmem:[%s4945_s3 + $0x468] sm:$0xff]  ;;  %v2405_v23 = vld [vmem:[%s4945_s3 + $0x560] sm:$0xff]  ;;  %v1871_v36 = vrot.slane %v1870_v15, 2  ;;  %v2423_v56 = vld [vmem:[%s4945_s3 + $0x5f0] sm:$0xff] }
 0x176   : > { %3089 = vmatprep.subr.bf16.mxu1 %v3088_v38  ;;  %v2399_v38 = vld [vmem:[%s4945_s3 + $0x530] sm:$0xff] }
 0x177   : > { %v1629_v47 = vrot.slane %v1136_v27, 4  ;;  %v1872_v44 = vadd.f32 %v1871_v36, %v1870_v15  ;;  %v2446_v15 = vld [vmem:[%s4945_s3 + $0x6a8] sm:$0xff]  ;;  %v2479_v36 = vld [vmem:[%s4945_s3 + $0x7b0] sm:$0xff] }
 0x178   : > { %3059 = vmatpush3.bf16.msra.mxu0 %v3058_v46  ;;  %v3106_v46 = vpack.c.bf16 %v2368_v34, %v2367_v32  ;;  %v3150_v32 = vpack.c.bf16 %v2406_v33, %v2405_v23  ;;  %v3120_v34 = vpack.c.bf16 %v2392_v7, %v2391_v53  ;;  %v2430_v23 = vld [vmem:[%s4945_s3 + $0x628] sm:$0xff]  ;;  %v2447_v53 = vld [vmem:[%s4945_s3 + $0x6b0] sm:$0xff]  ;;  %v2448_v7 = vld [vmem:[%s4945_s3 + $0x6b8] sm:$0xff] }
 0x179   : > { %3091 = vmatpush3.bf16.msra.mxu1 %v3090_v48  ;;  %3093 = vmatprep.subr.bf16.mxu0 %v3092_v49  ;;  %v3138_v48 = vpack.c.bf16 %v2400_v40, %v2399_v38  ;;  %v3108_v49 = vpack.c.bf16 %v2386_v42, %v2385_v41  ;;  %v1630_v63 = vadd.f32 %v1629_v47, %v1136_v27  ;;  %v2375_v38 = vld [vmem:[%s4945_s3 + $0x470] sm:$0xff]  ;;  %v2408_v42 = vld [vmem:[%s4945_s3 + $0x578] sm:$0xff]  ;;  %v1873_v58 = vrot.slane %v1872_v44, 1  ;;  %v2462_v33 = vld [vmem:[%s4945_s3 + $0x728] sm:$0xff] }
 0x17a   : > { %3125 = vmatprep.subr.bf16.mxu1 %v3124_v54  ;;  %v2402_v54 = vld [vmem:[%s4945_s3 + $0x548] sm:$0xff]  ;;  %v1644_v40 = vadd.f32 %v1643_v24, %v1642_v8  ;;  %v2459_v8 = vld [vmem:[%s4945_s3 + $0x710] sm:$0xff]  ;;  %v2461_v24 = vld [vmem:[%s4945_s3 + $0x720] sm:$0xff] }
 0x17b   : > { %1550 = vmatmul.mubr.f32.vlgmr.msra.gmra.mrb[10].mxu0 %v1169_v1  ;;  %v3142_v0 = vpack.c.bf16 %v2402_v54, %v2401_v51  ;;  %v3112_v1 = vpack.c.bf16 %v2388_v57, %v2387_v55  ;;  %v2425_v51 = vld [vmem:[%s4945_s3 + $0x600] sm:$0xff]  ;;  %v2458_v57 = vld [vmem:[%s4945_s3 + $0x708] sm:$0xff] }
 0x17c   : > { %1620 = vmatmul.mubr.f32.vlgmr.msra.gmra.mrb[10].mxu1 %v1181_v9  ;;  %3095 = vmatpush3.bf16.msra.mxu0 %v3094_v61  ;;  %v1881_v61 = vrot.slane %v1143_v45, 4  ;;  %v3144_v9 = vpack.c.bf16 %v2420_v60, %v2419_v59  ;;  %v2457_v55 = vld [vmem:[%s4945_s3 + $0x700] sm:$0xff]  ;;  %v2443_v59 = vld [vmem:[%s4945_s3 + $0x690] sm:$0xff]  ;;  %v2444_v60 = vld [vmem:[%s4945_s3 + $0x698] sm:$0xff] }
 0x17d   : > { %1782 = vmatprep.mubr.f32.mxu0 %v1640_v29  ;;  %3127 = vmatpush3.bf16.msra.mxu1 %v3126_v3  ;;  %v2371_v3 = vld [vmem:[%s4945_s3 + $0x450] sm:$0xff]  ;;  %v2421_v29 = vld [vmem:[%s4945_s3 + $0x5e0] sm:$0xff] }
 0x17e   : > { %1852 = vmatprep.mubr.f32.mxu1 %v1652_v19  ;;  %3097 = vmatprep.subr.bf16.mxu0 %v3096_v10  ;;  %v2404_v10 = vld [vmem:[%s4945_s3 + $0x558] sm:$0xff]  ;;  %v1882_v16 = vadd.f32 %v1881_v61, %v1143_v45  ;;  %v3114_v17 = vpack.c.bf16 %v2372_v4, %v2371_v3  ;;  %v1631_v19 = vrot.slane %v1630_v63, 2  ;;  %v2473_v45 = vld [vmem:[%s4945_s3 + $0x780] sm:$0xff]  ;;  %v3158_v61 = vpack.c.bf16 %v2426_v21, %v2425_v51  ;;  %v2427_v4 = vld [vmem:[%s4945_s3 + $0x610] sm:$0xff] }
 0x17f   : > { %3129 = vmatprep.subr.bf16.mxu1 %v3128_v35  ;;  %v2422_v35 = vld [vmem:[%s4945_s3 + $0x5e8] sm:$0xff]  ;;  %v3190_v3 = vpack.c.bf16 %v2458_v57, %v2457_v55  ;;  %v2451_v51 = vld [vmem:[%s4945_s3 + $0x6d0] sm:$0xff]  ;;  %v2452_v21 = vld [vmem:[%s4945_s3 + $0x6d8] sm:$0xff] }
 0x180   : > { %3099 = vmatpush3.bf16.msra.mxu0 %v3098_v20  ;;  %v3146_v20 = vpack.c.bf16 %v2404_v10, %v2403_v6  ;;  %v1883_v27 = vrot.slane %v1882_v16, 2  ;;  %v2428_v6 = vld [vmem:[%s4945_s3 + $0x618] sm:$0xff]  ;;  %v3160_v10 = vpack.c.bf16 %v2444_v60, %v2443_v59  ;;  %v3176_v59 = vpack.c.bf16 %v2452_v21, %v2451_v51  ;;  %v2435_v60 = vld [vmem:[%s4945_s3 + $0x650] sm:$0xff] }
 0x181   : > { %3131 = vmatpush3.bf16.msra.mxu1 %v3130_v31  ;;  %3101 = vmatprep.subr.bf16.mxu0 %v3100_v37  ;;  %v3116_v31 = vpack.c.bf16 %v2390_v13, %v2389_v11  ;;  %v2373_v37 = vld [vmem:[%s4945_s3 + $0x460] sm:$0xff]  ;;  %v2460_v11 = vld [vmem:[%s4945_s3 + $0x718] sm:$0xff] }
 0x182   : > { %3133 = vmatprep.subr.bf16.mxu1 %v3132_v25  ;;  %v3148_v25 = vpack.c.bf16 %v2422_v35, %v2421_v29  ;;  %v1884_v47 = vadd.f32 %v1883_v27, %v1882_v16  ;;  %v2445_v13 = vld [vmem:[%s4945_s3 + $0x6a0] sm:$0xff]  ;;  %v1874_v29 = vadd.f32 %v1873_v58, %v1872_v44  ;;  %v1140_v27 = vmax.f32 %v4297_v12, 0.0 }
 0x183   : > { %v2477_v16 = vld [vmem:[%s4945_s3 + $0x7a0] sm:$0xff] }
 0x184   : > { %3103 = vmatpush3.bf16.msra.mxu0 %v3102_v26  ;;  %v2424_v26 = vld [vmem:[%s4945_s3 + $0x5f8] sm:$0xff]  ;;  %v1863_v5 = vrot.slane %v1140_v27, 4 }
 0x185   : > { %3135 = vmatpush3.bf16.msra.mxu1 %v3134_v28  ;;  %3105 = vmatprep.subr.bf16.mxu0 %v3104_v30  ;;  %v3118_v28 = vpack.c.bf16 %v2374_v22, %v2373_v37  ;;  %v1632_v30 = vadd.f32 %v1631_v19, %v1630_v63  ;;  %v3152_v41 = vpack.c.bf16 %v2424_v26, %v2423_v56  ;;  %v2475_v63 = vld [vmem:[%s4945_s3 + $0x790] sm:$0xff]  ;;  %v2429_v22 = vld [vmem:[%s4945_s3 + $0x620] sm:$0xff]  ;;  %v2480_v56 = vld [vmem:[%s4945_s3 + $0x7b8] sm:$0xff] }
 0x186   : > { %3137 = vmatprep.subr.bf16.mxu1 %v3136_v2  ;;  %v2407_v2 = vld [vmem:[%s4945_s3 + $0x570] sm:$0xff]  ;;  %v3164_v37 = vpack.c.bf16 %v2446_v15, %v2445_v13  ;;  %v3166_v26 = vpack.c.bf16 %v2430_v23, %v2429_v22  ;;  %v3200_v12 = vpack.c.bf16 %v2480_v56, %v2479_v36  ;;  %v1864_v57 = vadd.f32 %v1863_v5, %v1140_v27  ;;  %v2437_v15 = vld [vmem:[%s4945_s3 + $0x660] sm:$0xff]  ;;  %v2488_v22 = vld [vmem:[%s4945_s3 + $0x7f8] sm:$0xff] }
 0x187   : > { %v3154_v18 = vpack.c.bf16 %v2408_v42, %v2407_v2  ;;  %v2464_v2 = vld [vmem:[%s4945_s3 + $0x738] sm:$0xff]  ;;  %v2481_v42 = vld [vmem:[%s4945_s3 + $0x7c0] sm:$0xff] }
 0x188   : > { %3107 = vmatpush3.bf16.msra.mxu0 %v3106_v46  ;;  %v2474_v46 = vld [vmem:[%s4945_s3 + $0x788] sm:$0xff]  ;;  %v2472_v27 = vld [vmem:[%s4945_s3 + $0x778] sm:$0xff] }
 0x189   : > { %3139 = vmatpush3.bf16.msra.mxu1 %v3138_v48  ;;  %3109 = vmatprep.subr.bf16.mxu0 %v3108_v49  ;;  %v3122_v48 = vpack.c.bf16 %v2376_v39, %v2375_v38  ;;  %v1633_v49 = vrot.slane %v1632_v30, 1  ;;  %v3188_v54 = vpack.c.bf16 %v2474_v46, %v2473_v45  ;;  %v2463_v38 = vld [vmem:[%s4945_s3 + $0x730] sm:$0xff]  ;;  %v1142_v39 = vmax.f32 %v4300_v14, 0.0  ;;  %v2482_v14 = vld [vmem:[%s4945_s3 + $0x7c8] sm:$0xff]  ;;  %v2433_v46 = vld [vmem:[%s4945_s3 + $0x640] sm:$0xff] }
 0x18a   : > { %3141 = vmatprep.subr.bf16.mxu1 %v3140_v52  ;;  %v1645_v52 = vrot.slane %v1644_v40, 1  ;;  %v3202_v44 = vpack.c.bf16 %v2464_v2, %v2463_v38 }
 0x18c   : > { %3111 = vmatpush3.bf16.msra.mxu0 %v3110_v62  ;;  %v1885_v62 = vrot.slane %v1884_v47, 1 }
 0x18d   : > { %3143 = vmatpush3.bf16.msra.mxu1 %v3142_v0  ;;  %3113 = vmatprep.subr.bf16.mxu0 %v3112_v1  ;;  %v2476_v0 = vld [vmem:[%s4945_s3 + $0x798] sm:$0xff]  ;;  %v1634_v1 = vadd.f32 %v1633_v49, %v1632_v30  ;;  %v3168_v30 = vpack.c.bf16 %v2448_v7, %v2447_v53  ;;  %v1875_v49 = vrot.slane %v1142_v39, 4  ;;  %v2439_v53 = vld [vmem:[%s4945_s3 + $0x670] sm:$0xff] }
 0x18e   : > { %3145 = vmatprep.subr.bf16.mxu1 %v3144_v9  ;;  %v1646_v9 = vadd.f32 %v1645_v52, %v1644_v40  ;;  %v3192_v35 = vpack.c.bf16 %v2476_v0, %v2475_v63  ;;  %v1886_v19 = vadd.f32 %v1885_v62, %v1884_v47  ;;  %v2449_v40 = vld [vmem:[%s4945_s3 + $0x6c0] sm:$0xff]  ;;  %v2434_v47 = vld [vmem:[%s4945_s3 + $0x648] sm:$0xff]  ;;  %v2483_v52 = vld [vmem:[%s4945_s3 + $0x7d0] sm:$0xff] }
 0x18f   : > { %v3174_v55 = vpack.c.bf16 %v2434_v47, %v2433_v46  ;;  %v2467_v62 = vld [vmem:[%s4945_s3 + $0x750] sm:$0xff]  ;;  %v1876_v63 = vadd.f32 %v1875_v49, %v1142_v39  ;;  %v2440_v7 = vld [vmem:[%s4945_s3 + $0x678] sm:$0xff] }
 0x190   : > { %3115 = vmatpush3.bf16.msra.mxu0 %v3114_v17  ;;  %v2478_v17 = vld [vmem:[%s4945_s3 + $0x7a8] sm:$0xff] }
 0x191   : > { %3147 = vmatpush3.bf16.msra.mxu1 %v3146_v20  ;;  %3117 = vmatprep.subr.bf16.mxu0 %v3116_v31  ;;  %v3162_v20 = vpack.c.bf16 %v2428_v6, %v2427_v4  ;;  %v3194_v31 = vpack.c.bf16 %v2460_v11, %v2459_v8  ;;  %v2454_v4 = vld [vmem:[%s4945_s3 + $0x6e8] sm:$0xff]  ;;  %v2485_v6 = vld [vmem:[%s4945_s3 + $0x7e0] sm:$0xff] }
 0x192   : > { %3149 = vmatprep.subr.bf16.mxu1 %v3148_v25  ;;  %v3196_v25 = vpack.c.bf16 %v2478_v17, %v2477_v16  ;;  %v2486_v8 = vld [vmem:[%s4945_s3 + $0x7e8] sm:$0xff]  ;;  %v1877_v16 = vrot.slane %v1876_v63, 2 }
 0x193   : > { %v3212_v17 = vpack.c.bf16 %v2486_v8, %v2485_v6 }
 0x194   : > { %3119 = vmatpush3.bf16.msra.mxu0 %v3118_v28  ;;  %v3198_v28 = vpack.c.bf16 %v2462_v33, %v2461_v24  ;;  %v1878_v36 = vadd.f32 %v1877_v16, %v1876_v63 }
 0x195   : > { %3151 = vmatpush3.bf16.msra.mxu1 %v3150_v32  ;;  %3121 = vmatprep.subr.bf16.mxu0 %v3120_v34  ;;  %v2431_v32 = vld [vmem:[%s4945_s3 + $0x630] sm:$0xff]  ;;  %v2432_v34 = vld [vmem:[%s4945_s3 + $0x638] sm:$0xff] }
 0x196   : > { %3153 = vmatprep.subr.bf16.mxu1 %v3152_v41  ;;  %v2450_v41 = vld [vmem:[%s4945_s3 + $0x6c8] sm:$0xff]  ;;  %v3170_v43 = vpack.c.bf16 %v2432_v34, %v2431_v32  ;;  %v1879_v34 = vrot.slane %v1878_v36, 1 }
 0x197   : > { %v3172_v45 = vpack.c.bf16 %v2450_v41, %v2449_v40 }
 0x198   : > { %3123 = vmatpush3.bf16.msra.mxu0 %v3122_v48  ;;  %v2465_v48 = vld [vmem:[%s4945_s3 + $0x740] sm:$0xff]  ;;  %v1880_v39 = vadd.f32 %v1879_v34, %v1878_v36 }
 0x199   : > { %3155 = vmatpush3.bf16.msra.mxu1 %v3154_v18  ;;  %3157 = vmatprep.subr.bf16.mxu0 %v3156_v50  ;;  %v3204_v18 = vpack.c.bf16 %v2482_v14, %v2481_v42  ;;  %v2466_v50 = vld [vmem:[%s4945_s3 + $0x748] sm:$0xff] }
 0x19a   : > { %3189 = vmatprep.subr.bf16.mxu1 %v3188_v54  ;;  %v2484_v54 = vld [vmem:[%s4945_s3 + $0x7d8] sm:$0xff]  ;;  %v3206_v58 = vpack.c.bf16 %v2466_v50, %v2465_v48 }
 0x19b   : > { %1783 = vmatmul.mubr.f32.vlgmr.msra.gmra.mrb[12].mxu0 %v1634_v1  ;;  %v3208_v0 = vpack.c.bf16 %v2484_v54, %v2483_v52  ;;  %v2468_v1 = vld [vmem:[%s4945_s3 + $0x758] sm:$0xff] }
 0x19c   : > { %1853 = vmatmul.mubr.f32.vlgmr.msra.gmra.mrb[12].mxu1 %v1646_v9  ;;  %3159 = vmatpush3.bf16.msra.mxu0 %v3158_v61  ;;  %v2436_v61 = vld [vmem:[%s4945_s3 + $0x658] sm:$0xff]  ;;  %v3210_v11 = vpack.c.bf16 %v2468_v1, %v2467_v62 }
 0x19d   : > { %2016 = vmatprep.mubr.f32.mxu0 %v1874_v29  ;;  %3191 = vmatpush3.bf16.msra.mxu1 %v3190_v3  ;;  %v2453_v3 = vld [vmem:[%s4945_s3 + $0x6e0] sm:$0xff]  ;;  %v3178_v9 = vpack.c.bf16 %v2436_v61, %v2435_v60  ;;  %v2438_v29 = vld [vmem:[%s4945_s3 + $0x668] sm:$0xff] }
 0x19e   : > { %2086 = vmatprep.mubr.f32.mxu1 %v1886_v19  ;;  %3161 = vmatprep.subr.bf16.mxu0 %v3160_v10  ;;  %v1865_v10 = vrot.slane %v1864_v57, 2  ;;  %v3180_v13 = vpack.c.bf16 %v2454_v4, %v2453_v3  ;;  %v2470_v19 = vld [vmem:[%s4945_s3 + $0x768] sm:$0xff]  ;;  %v3182_v23 = vpack.c.bf16 %v2438_v29, %v2437_v15  ;;  %v2093_v3 = vld [vmem:[%s4946_s4] sm:$0x1] }
 0x19f   : > { %3193 = vmatprep.subr.bf16.mxu1 %v3192_v35  ;;  %v2469_v35 = vld [vmem:[%s4945_s3 + $0x760] sm:$0xff] }
 0x1a0   : > { %3163 = vmatpush3.bf16.msra.mxu0 %v3162_v20  ;;  %v2455_v20 = vld [vmem:[%s4945_s3 + $0x6f0] sm:$0xff]  ;;  %v1866_v24 = vadd.f32 %v1865_v10, %v1864_v57 }
 0x1a1   : > { %3195 = vmatpush3.bf16.msra.mxu1 %v3194_v31  ;;  %3165 = vmatprep.subr.bf16.mxu0 %v3164_v37  ;;  %v2456_v31 = vld [vmem:[%s4945_s3 + $0x6f8] sm:$0xff]  ;;  %v2487_v37 = vld [vmem:[%s4945_s3 + $0x7f0] sm:$0xff] }
 0x1a2   : > { %3197 = vmatprep.subr.bf16.mxu1 %v3196_v25  ;;  %v3214_v25 = vpack.c.bf16 %v2470_v19, %v2469_v35  ;;  %v3184_v33 = vpack.c.bf16 %v2456_v31, %v2455_v20  ;;  %v3216_v56 = vpack.c.bf16 %v2488_v22, %v2487_v37 }
 0x1a4   : > { %3167 = vmatpush3.bf16.msra.mxu0 %v3166_v26  ;;  %v2471_v26 = vld [vmem:[%s4945_s3 + $0x770] sm:$0xff] }
 0x1a5   : > { %3199 = vmatpush3.bf16.msra.mxu1 %v3198_v28  ;;  %3169 = vmatprep.subr.bf16.mxu0 %v3168_v30  ;;  %v3186_v28 = vpack.c.bf16 %v2440_v7, %v2439_v53  ;;  %v1867_v30 = vrot.slane %v1866_v24, 1  ;;  %v3218_v32 = vpack.c.bf16 %v2472_v27, %v2471_v26 }
 0x1a6   : > { %3201 = vmatprep.subr.bf16.mxu1 %v3200_v12 }
 0x1a7   : > { %v1868_v38 = vadd.f32 %v1867_v30, %v1866_v24 }
 0x1a8   : > { %3171 = vmatpush3.bf16.msra.mxu0 %v3170_v43 }
 0x1a9   : > { %3203 = vmatpush3.bf16.msra.mxu1 %v3202_v44  ;;  %3173 = vmatprep.subr.bf16.mxu0 %v3172_v45 }
 0x1aa   : > { %3205 = vmatprep.subr.bf16.mxu1 %v3204_v18 }
 0x1ac   : > { %3175 = vmatpush3.bf16.msra.mxu0 %v3174_v55 }
 0x1ad   : > { %3207 = vmatpush3.bf16.msra.mxu1 %v3206_v58  ;;  %3177 = vmatprep.subr.bf16.mxu0 %v3176_v59 }
 0x1ae   : > { %3209 = vmatprep.subr.bf16.mxu1 %v3208_v0 }
 0x1b0   : > { %3179 = vmatpush3.bf16.msra.mxu0 %v3178_v9 }
 0x1b1   : > { %3211 = vmatpush3.bf16.msra.mxu1 %v3210_v11  ;;  %3181 = vmatprep.subr.bf16.mxu0 %v3180_v13 }
 0x1b2   : > { %3213 = vmatprep.subr.bf16.mxu1 %v3212_v17 }
 0x1b4   : > { %3183 = vmatpush3.bf16.msra.mxu0 %v3182_v23 }
 0x1b5   : > { %3215 = vmatpush3.bf16.msra.mxu1 %v3214_v25  ;;  %3185 = vmatprep.subr.bf16.mxu0 %v3184_v33 }
 0x1b6   : > { %3217 = vmatprep.subr.bf16.mxu1 %v3216_v56 }
 0x1b8   : > { %3187 = vmatpush3.bf16.msra.mxu0 %v3186_v28 }
 0x1b9   : > { %3219 = vmatpush3.bf16.msra.mxu1 %v3218_v32 }
 0x1bb   : > { %2017 = vmatmul.mubr.f32.vlgmr.msra.gmra.mrb[14].mxu0 %v1868_v38 }
 0x1bc   : > { %2087 = vmatmul.mubr.f32.vlgmr.msra.gmra.mrb[14].mxu1 %v1880_v39 }
 0x22e   : > { %v2524_v12 = vpop.f32.mrb[8].mxu0 }
 0x22f   : > { %v2559_v2 = vpop.f32.mrb[8].mxu1  ;;  %v2525_v40 = vpop.f32.mrb[9].mxu0 }
 0x230   : > { %v2526_v41 = vadd.f32 %v2525_v40, %v2524_v12  ;;  %v2560_v42 = vpop.f32.mrb[9].mxu1 }
 0x231   : > { %v2561_v14 = vadd.f32 %v2560_v42, %v2559_v2 }
 0x233   : > { %v1482_v43 = vadd.f32 %v2561_v14, %v2526_v41 }
 0x24e   : > { %v2594_v5 = vpop.f32.mrb[10].mxu0 }
 0x24f   : > { %v2629_v44 = vpop.f32.mrb[10].mxu1  ;;  %v2595_v45 = vpop.f32.mrb[11].mxu0 }
 0x250   : > { %v2596_v46 = vadd.f32 %v2595_v45, %v2594_v5  ;;  %v2630_v47 = vpop.f32.mrb[11].mxu1 }
 0x251   : > { %v2631_v48 = vadd.f32 %v2630_v47, %v2629_v44 }
 0x252   : > { %v1552_v49 = vadd.f32 %v2596_v46, %v1482_v43 }
 0x254   : > { %v1622_v18 = vadd.f32 %v2631_v48, %v1552_v49 }
 0x26e   : > { %v2664_v50 = vpop.f32.mrb[12].mxu0 }
 0x26f   : > { %v2699_v51 = vpop.f32.mrb[12].mxu1  ;;  %v2665_v21 = vpop.f32.mrb[13].mxu0 }
 0x270   : > { %v2666_v52 = vadd.f32 %v2665_v21, %v2664_v50  ;;  %v2700_v54 = vpop.f32.mrb[13].mxu1 }
 0x271   : > { %v2701_v55 = vadd.f32 %v2700_v54, %v2699_v51 }
 0x273   : > { %v1855_v57 = vadd.f32 %v2701_v55, %v2666_v52 }
 0x275   : > { %v1858_v58 = vadd.f32 %v1855_v57, %v1622_v18 }
 0x28e   : > { %v2734_v59 = vpop.f32.mrb[14].mxu0 }
 0x28f   : > { %v2769_v60 = vpop.f32.mrb[14].mxu1  ;;  %v2735_v61 = vpop.f32.mrb[15].mxu0 }
 0x290   : > { %v2736_v62 = vadd.f32 %v2735_v61, %v2734_v59  ;;  %v2770_v63 = vpop.f32.mrb[15].mxu1 }
 0x291   : > { %v2771_v0 = vadd.f32 %v2770_v63, %v2769_v60 }
 0x293   : > { %v2089_v1 = vadd.f32 %v2771_v0, %v2736_v62 }
 0x295   : > { %v2092_v4 = vadd.f32 %v2089_v1, %v1858_v58 }
 0x297   : > { %v2094_v6 = vadd.f32 %v2093_v3, %v2092_v4 }
 0x299   : > { %2095 = vst [vmem:[%s216_s17] sm:$0x1] %v2094_v6 }
 0x29a   : > { %3306 = shalt.err (!%p3303_p3)
}
 0x29b   : > { %s3307_s13 = scalar_lea.hbm %s4900_s9, 16  ;;  %s3311_s15 = scalar_lea.hbm %s4947_s5, 32 }
 0x29c   : > { %p3308_p4 = scmp.ne.s32.totalorder %s4900_s9, %s3307_s13  ;;  %p3312_p9 = scmp.lt.u32.totalorder %s4900_s9, %s4947_s5 }
 0x29d   : > { %p3313_p10 = scmp.lt.u32.totalorder %s3311_s15, %s3307_s13  ;;  %p3315_p12 = scmp.lt.u32.totalorder %s3307_s13, %s4900_s9 }
 0x29e   : > { %p3309_p7 = pnand %p3308_p4, %p3427_p5 }
 0x29f   : > { %p3314_p11 = por %p3313_p10, %p3312_p9 }
 0x2a0   : > { %p3310_p8 = pneg %p3309_p7 }
 0x2a1   : > { %p3316_p13 = por %p3315_p12, %p3314_p11 }
 0x2a3   : > { %p3317_p0 = pnand %p3316_p13, %p3310_p8 }
 0x2a5   : > { %3320 = shalt.err (!%p3317_p0)
}
 0x2a6   : > { %3253 = dma.vmem_to_hbm [thread:$0]  (%p3427_p5), %s4902_s6, 16, %s4900_s9, %s2097_s10  }
 0x2a7 PF: > { %p3259_p1 = scmp.ge.s32.totalorder %s3355_s21, 2  ;;  %s2121_s26 = sand.u32 1, %s3343_s18  }
 0x2a8   : > { %s2122_s17 = scalar_lea.sflag [#allocation4], %s2121_s26 }
 0x2a9   : > { %p3256_p2 = pnand %p3259_p1, %p3431_p6 }
 0x2ab   : > { %3338 = dma.done.wait (!%p3256_p2), %s2122_s17, 16  }
 0x2ac   : > { %3340 = vsyncadd (!%p3256_p2), %s2122_s17, 4294967280  ;;  %p15_p3 = scmp.ge.s32.totalorder %s3414_s24, 4   ;;  %s4950_s18 = smov %s3347_s19 }
 0x2ad   : > { %s4951_s19 = smov %s3351_s20  ;;  %s4952_s20 = smov %s3425_s27 }
 0x2ae   : > { %s4953_s21 = smov %s3414_s24  ;;  %17 = sbr.rel (!%p15_p3) target bundleno = 3 (0x3), region = 80 }
 0x2b5   :  { %2126 = vsyncpa [#allocation4], 1 }
 0x2b6   :  { %2128 = vsyncpa [#allocation4 + $0x1], 1 }

</bundles_post_ra>
